<compile_context>
chip_gen: v7x
topology: tpu7x:2x2x1
jax: 0.10.0
libtpu: 0.0.40
codegen_flags: <defaults>
</compile_context>

<pallas_src>
import jax
import jax.numpy as jnp
from jax import lax
from jax.experimental import pallas as pl
from jax.experimental.pallas import tpu as pltpu


_LANE = 128   # vreg lane width
_BC = 8       # batch rows per inner chunk (one f32 sublane group)
_OC = 8       # out   rows per inner chunk (one f32 sublane group)


def _round_up(n, m):
    return ((n + m - 1) // m) * m


def maxnorm_kernel(x_ref, v_ref, w_ref, d_ref, o_ref, acc_ref):
    """One (batch_tile, out_tile) output block; grid axis 2 streams IN tiles.

    x_ref:   (TB, TIN)        input tile (native dtype, upcast per chunk)
    v_ref:   (TOUT, TIN)      centers tile, f32
    w_ref:   (TOUT, TIN)      1/s tile, f32 (padded lanes are 0)
    d_ref:   (1, TOUT)        thresholds, f32
    o_ref:   (TB, TOUT)       output tile (lane-dense)
    acc_ref: (TB, TOUT, 128)  f32 lane-resident running max (scratch)
    """
    k = pl.program_id(2)

    @pl.when(k == 0)
    def _init():
        # |.| >= 0, so 0 is the identity for the running max.
        acc_ref[...] = jnp.zeros_like(acc_ref)

    tb, tin = x_ref.shape
    tout = v_ref.shape[0]
    n_bc = tb // _BC
    n_oc = tout // _OC
    n_lc = tin // _LANE

    # Stream (BC, OC, 128)-sized chunks: all work in the steady state is
    # elementwise (VPU) plus the acc read-modify-write; no cross-lane reduce
    # here and live temporaries stay at ~8 vregs.
    for bi in range(n_bc):
        b0 = bi * _BC
        x = x_ref[pl.ds(b0, _BC), :].astype(jnp.float32)          # (BC, TIN)

        def out_chunk(c, carry, x=x, b0=b0):
            o0 = pl.multiple_of(c * _OC, _OC)
            v = v_ref[pl.ds(o0, _OC), :]                          # (OC, TIN) f32
            w = w_ref[pl.ds(o0, _OC), :]                          # (OC, TIN) f32
            # Fold TIN lanes down to 128 with elementwise max (pure VALU).
            m = jnp.abs((x[:, None, :_LANE] - v[None, :, :_LANE])
                        * w[None, :, :_LANE])                     # (BC, OC, 128)
            for j in range(1, n_lc):
                lo = j * _LANE
                t = jnp.abs((x[:, None, lo:lo + _LANE] - v[None, :, lo:lo + _LANE])
                            * w[None, :, lo:lo + _LANE])
                m = jnp.maximum(m, t)
            cur = acc_ref[pl.ds(b0, _BC), pl.ds(o0, _OC), :]
            acc_ref[pl.ds(b0, _BC), pl.ds(o0, _OC), :] = jnp.maximum(cur, m)
            return carry

        lax.fori_loop(0, n_oc, out_chunk, 0)

    @pl.when(k == pl.num_programs(2) - 1)
    def _finalize():
        # The only cross-lane (XLU) reduce: once per output element per block,
        # instead of once per IN-grid step.
        mn = jnp.max(acc_ref[...], axis=-1)                       # (TB, TOUT)
        o_ref[...] = jnp.maximum(0.0, d_ref[...] - mn).astype(o_ref.dtype)


def max_norm_prepare(v, s, d, *, out_tile=128, in_tile=128):
    """Pad parameters and precompute 1/s.

    Parameters are static across forward calls: in real use call this once
    (whenever the parameters change) and reuse the result with
    max_norm_apply(); doing it per call costs an extra XLA pad + HBM round
    trip per forward.
    """
    size_out, size_in = v.shape
    outp = _round_up(size_out, out_tile)
    inp = _round_up(size_in, in_tile)
    inv_s = (1.0 / s).astype(jnp.float32)   # s == 0 -> inf, matching torch's x/0
    v_p = jnp.pad(v.astype(jnp.float32), ((0, outp - size_out), (0, inp - size_in)))
    # 1/s padded with 0 => padded IN lanes contribute |(x - v) * 0| = 0.
    w_p = jnp.pad(inv_s, ((0, outp - size_out), (0, inp - size_in)))
    d_p = jnp.pad(d.astype(jnp.float32), (0, outp - size_out)).reshape(1, outp)
    return v_p, w_p, d_p


def _pick_batch_tile(batch, max_tile=64):
    bt = min(_round_up(batch, 8), max_tile)
    # Prefer >= 2 blocks on the (parallel) batch grid axis when possible so
    # both TensorCores get work on v7x (no-op for single-TC v5e/v6e).
    if batch > 8 and _round_up(batch, bt) // bt < 2:
        bt = max(8, _round_up((batch + 1) // 2, 8))
    return bt


def max_norm_apply(x, v_p, w_p, d_p, size_out, *, batch_tile=None,
                   out_tile=128, in_tile=128):
    batch, size_in = x.shape
    outp, inp = v_p.shape
    assert out_tile % _LANE == 0 and outp % out_tile == 0
    assert in_tile % _LANE == 0 and inp % in_tile == 0

    if batch_tile is None:
        batch_tile = _pick_batch_tile(batch)
    assert batch_tile % _BC == 0

    bp = _round_up(batch, batch_tile)
    # x stays in its native dtype; the kernel upcasts per tile.
    x_p = jnp.pad(x, ((0, bp - batch), (0, inp - size_in)))

    grid = (bp // batch_tile, outp // out_tile, inp // in_tile)

    out_p = pl.pallas_call(
        maxnorm_kernel,
        out_shape=jax.ShapeDtypeStruct((bp, outp), x.dtype),
        grid_spec=pltpu.PrefetchScalarGridSpec(
            num_scalar_prefetch=0,
            grid=grid,  # batch, out (parallel); in (reduction) last
            in_specs=[
                pl.BlockSpec((batch_tile, in_tile), lambda b, o, k: (b, k)),  # x
                pl.BlockSpec((out_tile, in_tile), lambda b, o, k: (o, k)),    # v
                pl.BlockSpec((out_tile, in_tile), lambda b, o, k: (o, k)),    # 1/s
                pl.BlockSpec((1, out_tile), lambda b, o, k: (0, o)),          # d
            ],
            out_specs=pl.BlockSpec((batch_tile, out_tile), lambda b, o, k: (b, o)),
            scratch_shapes=[
                pltpu.VMEM((batch_tile, out_tile, _LANE), jnp.float32),
            ],
        ),
        # ~5 MiB total footprint: no vmem_limit override needed (and 64 MiB
        # would equal all of v7x's physical VMEM).
        compiler_params=pltpu.CompilerParams(
            dimension_semantics=("parallel", "parallel", "arbitrary"),
        ),
    )(x_p, v_p, w_p, d_p)

    return out_p[:batch, :size_out]


def max_norm_layer(x, v, s, d, *, batch_tile=None, out_tile=128, in_tile=128):
    """out[b, o] = max(0, d[o] - max_i |(x[b, i] - v[o, i]) / s[o, i]|)."""
    v_p, w_p, d_p = max_norm_prepare(v, s, d, out_tile=out_tile, in_tile=in_tile)
    return max_norm_apply(x, v_p, w_p, d_p, v.shape[0], batch_tile=batch_tile,
                          out_tile=out_tile, in_tile=in_tile)


def max_norm_layer_ref(x, v, s, d):
    # pure-JAX reference of the PyTorch forward
    diff = jnp.abs((x[:, None, :] - v[None, :, :]) / s[None, :, :])
    mn = jnp.max(diff, axis=-1)
    return jnp.maximum(0.0, d[None, :] - mn)


if __name__ == "__main__":
    size_in, size_out, batch = 32, 16, 8
    lambd = 0.01  # only used by get_weight_decay(); not part of the forward
    # TODO(synk): get_weight_decay() is a trivial parameter reduction; left to plain JAX.

    key = jax.random.PRNGKey(0)
    kd, kv, kx = jax.random.split(key, 3)

    # deterministic parameter init matching the module's __init__ shapes
    d = jax.random.uniform(kd, (size_out,), jnp.float32, 0.0, 10.0)  # uniform(0, 10)
    v = jax.random.normal(kv, (size_out, size_in), jnp.float32)      # randn
    s = jnp.ones((size_out, size_in), jnp.float32)                   # ones

    x = jax.random.normal(kx, (batch, size_in), jnp.float32)

    out = jax.block_until_ready(max_norm_layer(x, v, s, d))
    ref = max_norm_layer_ref(x, v, s, d)

    assert out.shape == (batch, size_out)
    assert jnp.allclose(out, ref, atol=1e-5, rtol=1e-5)
    print("KERNEL_OK")
</pallas_src>

<mosaic_0001>
module attributes {stable_mosaic.version = 11 : i64} {
  func.func @maxnorm_kernel(%arg0: i32, %arg1: i32, %arg2: i32, %arg3: memref<8x128xf32, #tpu.memory_space<vmem>>, %arg4: memref<128x128xf32, #tpu.memory_space<vmem>>, %arg5: memref<128x128xf32, #tpu.memory_space<vmem>>, %arg6: memref<1x128xf32, #tpu.memory_space<vmem>>, %arg7: memref<8x128xf32, #tpu.memory_space<vmem>>, %arg8: memref<8x128x128xf32, #tpu.memory_space<vmem>>) attributes {dimension_semantics = [#tpu.dimension_semantics<parallel>, #tpu.dimension_semantics<parallel>, #tpu.dimension_semantics<arbitrary>], iteration_bounds = array<i64: 1, 1, 1>, scalar_prefetch = 0 : i64, scratch_operands = 1 : i64, tpu.core_type = #tpu.core_type<tc>, window_params = [{transform_indices = @transform_0, window_bounds = array<i64: 8, 128>}, {transform_indices = @transform_1, window_bounds = array<i64: 128, 128>}, {transform_indices = @transform_2, window_bounds = array<i64: 128, 128>}, {transform_indices = @transform_3, window_bounds = array<i64: 1, 128>}, {transform_indices = @transform_4, window_bounds = array<i64: 8, 128>}]} {
    %c0_i32 = arith.constant 0 : i32
    %0 = arith.cmpi eq, %arg2, %c0_i32 : i32
    %1 = arith.extui %0 : i1 to i32
    %c0_i32_0 = arith.constant 0 : i32
    %2 = arith.cmpi ne, %1, %c0_i32_0 : i32
    scf.if %2 {
      %cst = arith.constant 0.000000e+00 : f32
      %8 = vector.broadcast %cst : f32 to vector<8x128x128xf32>
      %c0_6 = arith.constant 0 : index
      %c0_7 = arith.constant 0 : index
      %c0_8 = arith.constant 0 : index
      %9 = vector.load %arg8[%c0_6, %c0_7, %c0_8] : memref<8x128x128xf32, #tpu.memory_space<vmem>>, vector<8x128x128xf32>
      tpu.vector_store %arg8[%c0_6, %c0_7, %c0_8], %8 {strides = array<i32>} : memref<8x128x128xf32, #tpu.memory_space<vmem>>, vector<8x128x128xf32>,
    } else {
    }
    %c0 = arith.constant 0 : index
    %c0_1 = arith.constant 0 : index
    %3 = vector.load %arg3[%c0, %c0_1] : memref<8x128xf32, #tpu.memory_space<vmem>>, vector<8x128xf32>
    %c0_i32_2 = arith.constant 0 : i32
    %c16_i32 = arith.constant 16 : i32
    %4 = arith.addi %c0_i32_2, %c16_i32 : i32
    %c1_i32 = arith.constant 1 : i32
    scf.for %arg9 = %c0_i32_2 to %4 step %c1_i32  : i32 {
      %c8_i32 = arith.constant 8 : i32
      %8 = arith.muli %arg9, %c8_i32 : i32
      %9 = tpu.assume_multiple %8, 8 : i32
      %10 = arith.index_cast %9 : i32 to index
      %c0_6 = arith.constant 0 : index
      %11 = vector.load %arg4[%10, %c0_6] : memref<128x128xf32, #tpu.memory_space<vmem>>, vector<8x128xf32>
      %12 = arith.index_cast %9 : i32 to index
      %c0_7 = arith.constant 0 : index
      %13 = vector.load %arg5[%12, %c0_7] : memref<128x128xf32, #tpu.memory_space<vmem>>, vector<8x128xf32>
      %14 = vector.shape_cast %3 : vector<8x128xf32> to vector<8x1x128xf32>
      %15 = vector.shape_cast %11 : vector<8x128xf32> to vector<1x8x128xf32>
      %16 = vector.broadcast %14 : vector<8x1x128xf32> to vector<8x8x128xf32>
      %17 = vector.broadcast %15 : vector<1x8x128xf32> to vector<8x8x128xf32>
      %18 = arith.subf %16, %17 : vector<8x8x128xf32>
      %19 = vector.shape_cast %13 : vector<8x128xf32> to vector<1x8x128xf32>
      %20 = vector.broadcast %19 : vector<1x8x128xf32> to vector<8x8x128xf32>
      %21 = arith.mulf %18, %20 : vector<8x8x128xf32>
      %22 = math.absf %21 : vector<8x8x128xf32>
      %c0_8 = arith.constant 0 : index
      %23 = arith.index_cast %9 : i32 to index
      %c0_9 = arith.constant 0 : index
      %24 = vector.load %arg8[%c0_8, %23, %c0_9] : memref<8x128x128xf32, #tpu.memory_space<vmem>>, vector<8x8x128xf32>
      %25 = arith.maximumf %24, %22 : vector<8x8x128xf32>
      %c0_10 = arith.constant 0 : index
      %26 = arith.index_cast %9 : i32 to index
      %c0_11 = arith.constant 0 : index
      %27 = vector.load %arg8[%c0_10, %26, %c0_11] : memref<8x128x128xf32, #tpu.memory_space<vmem>>, vector<8x8x128xf32>
      tpu.vector_store %arg8[%c0_10, %26, %c0_11], %25 {strides = array<i32>} : memref<8x128x128xf32, #tpu.memory_space<vmem>>, vector<8x8x128xf32>,
    }
    %c16_i32_3 = arith.constant 16 : i32
    %c0_i32_4 = arith.constant 0 : i32
    %5 = arith.cmpi eq, %arg2, %c0_i32_4 : i32
    %6 = arith.extui %5 : i1 to i32
    %c0_i32_5 = arith.constant 0 : i32
    %7 = arith.cmpi ne, %6, %c0_i32_5 : i32
    scf.if %7 {
      %c0_6 = arith.constant 0 : index
      %c0_7 = arith.constant 0 : index
      %c0_8 = arith.constant 0 : index
      %8 = vector.load %arg8[%c0_6, %c0_7, %c0_8] : memref<8x128x128xf32, #tpu.memory_space<vmem>>, vector<8x128x128xf32>
      %cst = arith.constant dense<0xFF800000> : vector<8x128xf32>
      %9 = vector.multi_reduction <maximumf>, %8, %cst [2] : vector<8x128x128xf32> to vector<8x128xf32>
      %c0_9 = arith.constant 0 : index
      %c0_10 = arith.constant 0 : index
      %10 = vector.load %arg6[%c0_9, %c0_10] : memref<1x128xf32, #tpu.memory_space<vmem>>, vector<1x128xf32>
      %11 = vector.broadcast %10 : vector<1x128xf32> to vector<8x128xf32>
      %12 = arith.subf %11, %9 : vector<8x128xf32>
      %cst_11 = arith.constant 0.000000e+00 : f32
      %13 = vector.broadcast %cst_11 : f32 to vector<8x128xf32>
      %14 = arith.maximumf %13, %12 : vector<8x128xf32>
      %c0_12 = arith.constant 0 : index
      %c0_13 = arith.constant 0 : index
      %15 = vector.load %arg7[%c0_12, %c0_13] : memref<8x128xf32, #tpu.memory_space<vmem>>, vector<8x128xf32>
      tpu.vector_store %arg7[%c0_12, %c0_13], %14 {strides = array<i32>} : memref<8x128xf32, #tpu.memory_space<vmem>>, vector<8x128xf32>,
    } else {
    }
    return
  }
  func.func @transform_0(%arg0: i32, %arg1: i32, %arg2: i32) -> (i32, i32) {
    %c0_i32 = arith.constant 0 : i32
    return %arg0, %arg2 : i32, i32
  }
  func.func @transform_1(%arg0: i32, %arg1: i32, %arg2: i32) -> (i32, i32) {
    %c0_i32 = arith.constant 0 : i32
    return %arg1, %arg2 : i32, i32
  }
  func.func @transform_2(%arg0: i32, %arg1: i32, %arg2: i32) -> (i32, i32) {
    %c0_i32 = arith.constant 0 : i32
    return %arg1, %arg2 : i32, i32
  }
  func.func @transform_3(%arg0: i32, %arg1: i32, %arg2: i32) -> (i32, i32) {
    %c0_i32 = arith.constant 0 : i32
    %c0_i32_0 = arith.constant 0 : i32
    return %c0_i32, %arg1 : i32, i32
  }
  func.func @transform_4(%arg0: i32, %arg1: i32, %arg2: i32) -> (i32, i32) {
    %c0_i32 = arith.constant 0 : i32
    return %arg0, %arg1 : i32, i32
  }
}

</mosaic_0001>

<bundles_post_ra>
// kernel: tpu_custom_call.1
= control target key start
LH: loop header
LB: loop body
LE: loop exit
PB: predicated region body
PF: predicated region fallthrough
CT: control target
= control target key end

     0   :  { %9 = vsyncpa [#allocation4], 0  ;;  %s2313_s0 = inlined_call_operand.hbm [shape: f32[8,128], index: 0, kind: input, shape index: {}]   ;;  %s2314_s1 = inlined_call_operand.hbm [shape: f32[128,128], index: 1, kind: input, shape index: {}]   ;;  %s2315_s2 = inlined_call_operand.hbm [shape: f32[128,128], index: 2, kind: input, shape index: {}]   ;;  %s2316_s3 = inlined_call_operand.vmem [shape: f32[1,128], index: 3, kind: input, shape index: {}]   ;;  %s2317_s4 = inlined_call_operand.hbm [shape: f32[8,128], index: 4, kind: output, shape index: {}]  }
   0x1   :  { %10 = vsyncpa [#allocation7], 0 }
   0x2   :  { %11 = vsyncpa [#allocation5], 0  ;;  %s1691_s15 = smov [#allocation6]   ;;  %s1589_s19 = scalar_lea.hbm %s2314_s1, 2048 }
   0x3   :  { %s27_s16 = sshll.u32 %s1691_s15, 4  ;;  %p1590_p0 = scmp.ne.s32.totalorder %s2314_s1, %s1589_s19  ;;  %s28_s16 = int_to_ptr.vmem [resolvable:$true] %s27_s16 }
   0x4   :  { %p1593_p1 = scmp.lt.u32.totalorder %s1589_s19, %s2314_s1 }
   0x6   :  { %p1595_p2 = pnand %p1593_p1, %p1590_p0 }
   0x8   :  { %1598 = shalt.err (!%p1595_p2)
}
   0x9   :  { %s1599_s24 = scalar_lea.vmem %s28_s16, 2048  ;;  %p1604_p4 = scmp.lt.s32.totalorder %s28_s16, %s28_s16 }
   0xa   :  { %p1600_p3 = scmp.ne.s32.totalorder %s28_s16, %s1599_s24  ;;  %p1605_p5 = scmp.lt.s32.totalorder %s1599_s24, %s1599_s24 }
   0xc   :  { %p1606_p6 = por %p1605_p5, %p1604_p4 }
   0xe   :  { %p1607_p7 = pnand %p1606_p6, %p1600_p3 }
  0x10   :  { %1610 = shalt.err (!%p1607_p7)
}
  0x11   :  { %s1692_s25 = smov 128   ;;  %s1693_s26 = smov 8  }
  0x12   :  { %33 = dma.hbm_to_vmem [thread:$0]  %s2314_s1, 2048, %s28_s16, [#allocation7], %s1692_s25, %s1692_s25, %s1693_s26  }
  0x13   :  { %s1694_s29 = smov [#allocation3]   ;;  %s1695_s5 = smov [#allocation8]  }
  0x14   :  { %s18_s30 = sshll.u32 %s1694_s29, 4  ;;  %s39_s6 = sshll.u32 %s1695_s5, 4  ;;  %s19_s30 = int_to_ptr.vmem [resolvable:$true] %s18_s30  ;;  %s40_s6 = int_to_ptr.vmem [resolvable:$true] %s39_s6 }
  0x15   :  { %s1611_s9 = scalar_lea.hbm %s2313_s0, 128 }
  0x16   :  { %p1612_p8 = scmp.ne.s32.totalorder %s2313_s0, %s1611_s9  ;;  %p1615_p9 = scmp.lt.u32.totalorder %s1611_s9, %s2313_s0 }
  0x18   :  { %p1617_p10 = pnand %p1615_p9, %p1612_p8 }
  0x1a   :  { %1620 = shalt.err (!%p1617_p10)
}
  0x1b   :  { %s1621_s1 = scalar_lea.vmem %s19_s30, 128  ;;  %p1626_p12 = scmp.lt.s32.totalorder %s19_s30, %s19_s30 }
  0x1c   :  { %p1622_p11 = scmp.ne.s32.totalorder %s19_s30, %s1621_s1  ;;  %p1627_p13 = scmp.lt.s32.totalorder %s1621_s1, %s1621_s1 }
  0x1e   :  { %p1628_p0 = por %p1627_p13, %p1626_p12 }
  0x20   :  { %p1629_p1 = pnand %p1628_p0, %p1622_p11 }
  0x22   :  { %1632 = shalt.err (!%p1629_p1)
}
  0x23   :  { %21 = dma.hbm_to_vmem [thread:$0]  %s2313_s0, 128, %s19_s30, [#allocation4]  }
  0x24   :  { %s1633_s18 = scalar_lea.hbm %s2315_s2, 2048 }
  0x25   :  { %p1634_p2 = scmp.ne.s32.totalorder %s2315_s2, %s1633_s18  ;;  %p1637_p3 = scmp.lt.u32.totalorder %s1633_s18, %s2315_s2 }
  0x27   :  { %p1639_p4 = pnand %p1637_p3, %p1634_p2 }
  0x29   :  { %1642 = shalt.err (!%p1639_p4)
}
  0x2a   :  { %s1643_s23 = scalar_lea.vmem %s40_s6, 2048  ;;  %p1648_p6 = scmp.lt.s32.totalorder %s40_s6, %s40_s6 }
  0x2b   :  { %p1644_p5 = scmp.ne.s32.totalorder %s40_s6, %s1643_s23  ;;  %p1649_p7 = scmp.lt.s32.totalorder %s1643_s23, %s1643_s23 }
  0x2d   :  { %p1650_p8 = por %p1649_p7, %p1648_p6 }
  0x2f   :  { %p1651_p9 = pnand %p1650_p8, %p1644_p5 }
  0x31   :  { %1654 = shalt.err (!%p1651_p9)
}
  0x32   :  { %45 = dma.hbm_to_vmem [thread:$0]  %s2315_s2, 2048, %s40_s6, [#allocation7], %s1692_s25, %s1692_s25, %s1693_s26  }
  0x33   :  { %1681 = dma.done.wait [#allocation4], 128  }
  0x34   :  { %1682 = vsyncadd [#allocation4], 4294967168 }
  0x35   :  { %1683 = dma.done.wait [#allocation7], 4096  }
  0x36   :  { %1684 = vsyncadd [#allocation7], 4294963200  ;;  %v1696_v0 = vmov 0.0   ;;  %v1894_v1 = vld [vmem:[#allocation3] sm:$0xff]  ;;  %s1896_s2 = smov 0  }
  0x37   :  { %61 = vst [vmem:[#allocation2] sm:$0xff] %v1696_v0  ;;  %62 = vst [vmem:[#allocation2 + $0x8] sm:$0xff] %v1696_v0 }
  0x38   :  { %63 = vst [vmem:[#allocation2 + $0x10] sm:$0xff] %v1696_v0  ;;  %64 = vst [vmem:[#allocation2 + $0x18] sm:$0xff] %v1696_v0 }
  0x39   :  { %65 = vst [vmem:[#allocation2 + $0x20] sm:$0xff] %v1696_v0  ;;  %66 = vst [vmem:[#allocation2 + $0x28] sm:$0xff] %v1696_v0 }
  0x3a   :  { %67 = vst [vmem:[#allocation2 + $0x30] sm:$0xff] %v1696_v0  ;;  %68 = vst [vmem:[#allocation2 + $0x38] sm:$0xff] %v1696_v0 }
  0x3b   :  { %69 = vst [vmem:[#allocation2 + $0x40] sm:$0xff] %v1696_v0  ;;  %70 = vst [vmem:[#allocation2 + $0x48] sm:$0xff] %v1696_v0 }
  0x3c   :  { %71 = vst [vmem:[#allocation2 + $0x50] sm:$0xff] %v1696_v0  ;;  %72 = vst [vmem:[#allocation2 + $0x58] sm:$0xff] %v1696_v0 }
  0x3d   :  { %73 = vst [vmem:[#allocation2 + $0x60] sm:$0xff] %v1696_v0  ;;  %74 = vst [vmem:[#allocation2 + $0x68] sm:$0xff] %v1696_v0 }
  0x3e   :  { %75 = vst [vmem:[#allocation2 + $0x70] sm:$0xff] %v1696_v0  ;;  %76 = vst [vmem:[#allocation2 + $0x78] sm:$0xff] %v1696_v0 }
  0x3f   :  { %77 = vst [vmem:[#allocation2 + $0x80] sm:$0xff] %v1696_v0  ;;  %78 = vst [vmem:[#allocation2 + $0x88] sm:$0xff] %v1696_v0 }
  0x40   :  { %79 = vst [vmem:[#allocation2 + $0x90] sm:$0xff] %v1696_v0  ;;  %80 = vst [vmem:[#allocation2 + $0x98] sm:$0xff] %v1696_v0 }
  0x41   :  { %81 = vst [vmem:[#allocation2 + $0xa0] sm:$0xff] %v1696_v0  ;;  %82 = vst [vmem:[#allocation2 + $0xa8] sm:$0xff] %v1696_v0 }
  0x42   :  { %83 = vst [vmem:[#allocation2 + $0xb0] sm:$0xff] %v1696_v0  ;;  %84 = vst [vmem:[#allocation2 + $0xb8] sm:$0xff] %v1696_v0 }
  0x43   :  { %85 = vst [vmem:[#allocation2 + $0xc0] sm:$0xff] %v1696_v0  ;;  %86 = vst [vmem:[#allocation2 + $0xc8] sm:$0xff] %v1696_v0 }
  0x44   :  { %87 = vst [vmem:[#allocation2 + $0xd0] sm:$0xff] %v1696_v0  ;;  %88 = vst [vmem:[#allocation2 + $0xd8] sm:$0xff] %v1696_v0 }
  0x45   :  { %89 = vst [vmem:[#allocation2 + $0xe0] sm:$0xff] %v1696_v0  ;;  %90 = vst [vmem:[#allocation2 + $0xe8] sm:$0xff] %v1696_v0 }
  0x46   :  { %91 = vst [vmem:[#allocation2 + $0xf0] sm:$0xff] %v1696_v0  ;;  %92 = vst [vmem:[#allocation2 + $0xf8] sm:$0xff] %v1696_v0 }
  0x47   :  { %93 = vst [vmem:[#allocation2 + $0x100] sm:$0xff] %v1696_v0  ;;  %94 = vst [vmem:[#allocation2 + $0x108] sm:$0xff] %v1696_v0 }
  0x48   :  { %95 = vst [vmem:[#allocation2 + $0x110] sm:$0xff] %v1696_v0  ;;  %96 = vst [vmem:[#allocation2 + $0x118] sm:$0xff] %v1696_v0 }
  0x49   :  { %97 = vst [vmem:[#allocation2 + $0x120] sm:$0xff] %v1696_v0  ;;  %98 = vst [vmem:[#allocation2 + $0x128] sm:$0xff] %v1696_v0 }
  0x4a   :  { %99 = vst [vmem:[#allocation2 + $0x130] sm:$0xff] %v1696_v0  ;;  %100 = vst [vmem:[#allocation2 + $0x138] sm:$0xff] %v1696_v0 }
  0x4b   :  { %101 = vst [vmem:[#allocation2 + $0x140] sm:$0xff] %v1696_v0  ;;  %102 = vst [vmem:[#allocation2 + $0x148] sm:$0xff] %v1696_v0 }
  0x4c   :  { %103 = vst [vmem:[#allocation2 + $0x150] sm:$0xff] %v1696_v0  ;;  %104 = vst [vmem:[#allocation2 + $0x158] sm:$0xff] %v1696_v0 }
  0x4d   :  { %105 = vst [vmem:[#allocation2 + $0x160] sm:$0xff] %v1696_v0  ;;  %106 = vst [vmem:[#allocation2 + $0x168] sm:$0xff] %v1696_v0 }
  0x4e   :  { %107 = vst [vmem:[#allocation2 + $0x170] sm:$0xff] %v1696_v0  ;;  %108 = vst [vmem:[#allocation2 + $0x178] sm:$0xff] %v1696_v0 }
  0x4f   :  { %109 = vst [vmem:[#allocation2 + $0x180] sm:$0xff] %v1696_v0  ;;  %110 = vst [vmem:[#allocation2 + $0x188] sm:$0xff] %v1696_v0 }
  0x50   :  { %111 = vst [vmem:[#allocation2 + $0x190] sm:$0xff] %v1696_v0  ;;  %112 = vst [vmem:[#allocation2 + $0x198] sm:$0xff] %v1696_v0 }
  0x51   :  { %113 = vst [vmem:[#allocation2 + $0x1a0] sm:$0xff] %v1696_v0  ;;  %114 = vst [vmem:[#allocation2 + $0x1a8] sm:$0xff] %v1696_v0 }
  0x52   :  { %115 = vst [vmem:[#allocation2 + $0x1b0] sm:$0xff] %v1696_v0  ;;  %116 = vst [vmem:[#allocation2 + $0x1b8] sm:$0xff] %v1696_v0 }
  0x53   :  { %117 = vst [vmem:[#allocation2 + $0x1c0] sm:$0xff] %v1696_v0  ;;  %118 = vst [vmem:[#allocation2 + $0x1c8] sm:$0xff] %v1696_v0 }
  0x54   :  { %119 = vst [vmem:[#allocation2 + $0x1d0] sm:$0xff] %v1696_v0  ;;  %120 = vst [vmem:[#allocation2 + $0x1d8] sm:$0xff] %v1696_v0 }
  0x55   :  { %121 = vst [vmem:[#allocation2 + $0x1e0] sm:$0xff] %v1696_v0  ;;  %122 = vst [vmem:[#allocation2 + $0x1e8] sm:$0xff] %v1696_v0 }
  0x56   :  { %123 = vst [vmem:[#allocation2 + $0x1f0] sm:$0xff] %v1696_v0  ;;  %124 = vst [vmem:[#allocation2 + $0x1f8] sm:$0xff] %v1696_v0 }
  0x57   :  { %125 = vst [vmem:[#allocation2 + $0x200] sm:$0xff] %v1696_v0  ;;  %126 = vst [vmem:[#allocation2 + $0x208] sm:$0xff] %v1696_v0 }
  0x58   :  { %127 = vst [vmem:[#allocation2 + $0x210] sm:$0xff] %v1696_v0  ;;  %128 = vst [vmem:[#allocation2 + $0x218] sm:$0xff] %v1696_v0 }
  0x59   :  { %129 = vst [vmem:[#allocation2 + $0x220] sm:$0xff] %v1696_v0  ;;  %130 = vst [vmem:[#allocation2 + $0x228] sm:$0xff] %v1696_v0 }
  0x5a   :  { %131 = vst [vmem:[#allocation2 + $0x230] sm:$0xff] %v1696_v0  ;;  %132 = vst [vmem:[#allocation2 + $0x238] sm:$0xff] %v1696_v0 }
  0x5b   :  { %133 = vst [vmem:[#allocation2 + $0x240] sm:$0xff] %v1696_v0  ;;  %134 = vst [vmem:[#allocation2 + $0x248] sm:$0xff] %v1696_v0 }
  0x5c   :  { %135 = vst [vmem:[#allocation2 + $0x250] sm:$0xff] %v1696_v0  ;;  %136 = vst [vmem:[#allocation2 + $0x258] sm:$0xff] %v1696_v0 }
  0x5d   :  { %137 = vst [vmem:[#allocation2 + $0x260] sm:$0xff] %v1696_v0  ;;  %138 = vst [vmem:[#allocation2 + $0x268] sm:$0xff] %v1696_v0 }
  0x5e   :  { %139 = vst [vmem:[#allocation2 + $0x270] sm:$0xff] %v1696_v0  ;;  %140 = vst [vmem:[#allocation2 + $0x278] sm:$0xff] %v1696_v0 }
  0x5f   :  { %141 = vst [vmem:[#allocation2 + $0x280] sm:$0xff] %v1696_v0  ;;  %142 = vst [vmem:[#allocation2 + $0x288] sm:$0xff] %v1696_v0 }
  0x60   :  { %143 = vst [vmem:[#allocation2 + $0x290] sm:$0xff] %v1696_v0  ;;  %144 = vst [vmem:[#allocation2 + $0x298] sm:$0xff] %v1696_v0 }
  0x61   :  { %145 = vst [vmem:[#allocation2 + $0x2a0] sm:$0xff] %v1696_v0  ;;  %146 = vst [vmem:[#allocation2 + $0x2a8] sm:$0xff] %v1696_v0 }
  0x62   :  { %147 = vst [vmem:[#allocation2 + $0x2b0] sm:$0xff] %v1696_v0  ;;  %148 = vst [vmem:[#allocation2 + $0x2b8] sm:$0xff] %v1696_v0 }
  0x63   :  { %149 = vst [vmem:[#allocation2 + $0x2c0] sm:$0xff] %v1696_v0  ;;  %150 = vst [vmem:[#allocation2 + $0x2c8] sm:$0xff] %v1696_v0 }
  0x64   :  { %151 = vst [vmem:[#allocation2 + $0x2d0] sm:$0xff] %v1696_v0  ;;  %152 = vst [vmem:[#allocation2 + $0x2d8] sm:$0xff] %v1696_v0 }
  0x65   :  { %153 = vst [vmem:[#allocation2 + $0x2e0] sm:$0xff] %v1696_v0  ;;  %154 = vst [vmem:[#allocation2 + $0x2e8] sm:$0xff] %v1696_v0 }
  0x66   :  { %155 = vst [vmem:[#allocation2 + $0x2f0] sm:$0xff] %v1696_v0  ;;  %156 = vst [vmem:[#allocation2 + $0x2f8] sm:$0xff] %v1696_v0 }
  0x67   :  { %157 = vst [vmem:[#allocation2 + $0x300] sm:$0xff] %v1696_v0  ;;  %158 = vst [vmem:[#allocation2 + $0x308] sm:$0xff] %v1696_v0 }
  0x68   :  { %159 = vst [vmem:[#allocation2 + $0x310] sm:$0xff] %v1696_v0  ;;  %160 = vst [vmem:[#allocation2 + $0x318] sm:$0xff] %v1696_v0 }
  0x69   :  { %161 = vst [vmem:[#allocation2 + $0x320] sm:$0xff] %v1696_v0  ;;  %162 = vst [vmem:[#allocation2 + $0x328] sm:$0xff] %v1696_v0 }
  0x6a   :  { %163 = vst [vmem:[#allocation2 + $0x330] sm:$0xff] %v1696_v0  ;;  %164 = vst [vmem:[#allocation2 + $0x338] sm:$0xff] %v1696_v0 }
  0x6b   :  { %165 = vst [vmem:[#allocation2 + $0x340] sm:$0xff] %v1696_v0  ;;  %166 = vst [vmem:[#allocation2 + $0x348] sm:$0xff] %v1696_v0 }
  0x6c   :  { %167 = vst [vmem:[#allocation2 + $0x350] sm:$0xff] %v1696_v0  ;;  %168 = vst [vmem:[#allocation2 + $0x358] sm:$0xff] %v1696_v0 }
  0x6d   :  { %169 = vst [vmem:[#allocation2 + $0x360] sm:$0xff] %v1696_v0  ;;  %170 = vst [vmem:[#allocation2 + $0x368] sm:$0xff] %v1696_v0 }
  0x6e   :  { %171 = vst [vmem:[#allocation2 + $0x370] sm:$0xff] %v1696_v0  ;;  %172 = vst [vmem:[#allocation2 + $0x378] sm:$0xff] %v1696_v0 }
  0x6f   :  { %173 = vst [vmem:[#allocation2 + $0x380] sm:$0xff] %v1696_v0  ;;  %174 = vst [vmem:[#allocation2 + $0x388] sm:$0xff] %v1696_v0 }
  0x70   :  { %175 = vst [vmem:[#allocation2 + $0x390] sm:$0xff] %v1696_v0  ;;  %176 = vst [vmem:[#allocation2 + $0x398] sm:$0xff] %v1696_v0 }
  0x71   :  { %177 = vst [vmem:[#allocation2 + $0x3a0] sm:$0xff] %v1696_v0  ;;  %178 = vst [vmem:[#allocation2 + $0x3a8] sm:$0xff] %v1696_v0 }
  0x72   :  { %179 = vst [vmem:[#allocation2 + $0x3b0] sm:$0xff] %v1696_v0  ;;  %180 = vst [vmem:[#allocation2 + $0x3b8] sm:$0xff] %v1696_v0 }
  0x73   :  { %181 = vst [vmem:[#allocation2 + $0x3c0] sm:$0xff] %v1696_v0  ;;  %182 = vst [vmem:[#allocation2 + $0x3c8] sm:$0xff] %v1696_v0 }
  0x74   :  { %183 = vst [vmem:[#allocation2 + $0x3d0] sm:$0xff] %v1696_v0  ;;  %184 = vst [vmem:[#allocation2 + $0x3d8] sm:$0xff] %v1696_v0 }
  0x75   :  { %185 = vst [vmem:[#allocation2 + $0x3e0] sm:$0xff] %v1696_v0  ;;  %186 = vst [vmem:[#allocation2 + $0x3e8] sm:$0xff] %v1696_v0 }
  0x76   :  { %187 = vst [vmem:[#allocation2 + $0x3f0] sm:$0xff] %v1696_v0  ;;  %188 = vst [vmem:[#allocation2 + $0x3f8] sm:$0xff] %v1696_v0 }
  0x77 LB: > { %v206_v2 = vlaneseq  ;;  %v1697_v3 = vmov 1966171168   ;;  %v202_v7 = vcombine.high %v1894_v1, %v1894_v1  ;;  %s1907_s25 = sshll.u32 %s1689_s2, 3  ;;  %s195_s2 = sadd.s32 1, %s1689_s2   ;;  %s1689_s2 = sphi %s1896_s2, %s195_s2  }
  0x78   : > { %v204_v4 = vunpack.c.l.s4 %v1697_v3  ;;  %s197_s26 = scalar_lea.vmem [#allocation6], %s1907_s25  ;;  %s199_s27 = scalar_lea.vmem [#allocation8], %s1907_s25 }
  0x79   : > { %v1902_v5 = vshrl.u32 %v206_v2, 7  ;;  %v198_v16 = vld [vmem:[%s197_s26] sm:$0xff]  ;;  %s1915_s28 = scalar_lea.vmem [#allocation2], %s1907_s25  ;;  %p192_p10 = scmp.ge.s32.totalorder %s195_s2, 16  }
  0x7a   : > { %v205_v6 = vunpack.c.0.s8 %v204_v4  ;;  %v200_v21 = vld [vmem:[%s199_s27] sm:$0xff]  ;;  %vm873_vm0 = vcmask (%p192_p10), 130112   ;;  %vm880_vm1 = vcmask (%p192_p10), 195712   ;;  %vm887_vm2 = vcmask (%p192_p10), 261312   ;;  %s1698_s5 = smov (%p192_p10), [#allocation9]  }
  0x7b   : > { %v253_v10 = vsub.s32 0, %v1902_v5  ;;  %vm894_vm3 = vcmask (%p192_p10), 326912   ;;  %vm901_vm4 = vcmask (%p192_p10), 392512   ;;  %vm908_vm5 = vcmask (%p192_p10), 458112   ;;  %s1550_s6 = sshll.u32 (%p192_p10), %s1698_s5, 4  ;;  %s1551_s6 = int_to_ptr.vmem [resolvable:$true] %s1550_s6 }
  0x7c   : > { %v208_v8 = vsub.s32 %v205_v6, %v1902_v5  ;;  %vm915_vm6 = vcmask (%p192_p10), 523712   ;;  %vm922_vm7 = vcmask (%p192_p10), 589312   ;;  %vm929_vm8 = vcmask (%p192_p10), 654912   ;;  %s1655_s7 = scalar_lea.vmem (%p192_p10), %s1551_s6, 128  ;;  %p1660_p12 = scmp.lt.s32.totalorder (%p192_p10), %s1551_s6, %s1551_s6 }
  0x7d   : > { %v316_v36 = vld [vmem:[%s1915_s28] sm:$0xff]  ;;  %vm936_vm9 = vcmask (%p192_p10), 720512   ;;  %vm943_vm10 = vcmask (%p192_p10), 786112   ;;  %vm950_vm11 = vcmask (%p192_p10), 851712   ;;  %vm957_vm12 = vcmask (%p192_p10), 917312   ;;  %p1656_p11 = scmp.ne.s32.totalorder (%p192_p10), %s1551_s6, %s1655_s7  ;;  %p1661_p13 = scmp.lt.s32.totalorder (%p192_p10), %s1655_s7, %s1655_s7 }
  0x7e   : > { %v209_v9 = vrot.slane %v1894_v1, %v208_v8  ;;  %v216_v11 = vrot.slane %v202_v7, %v208_v8  ;;  %v320_v45 = vld [vmem:[%s1915_s28 + $0x200] sm:$0xff]  ;;  %vm964_vm13 = vcmask (%p192_p10), 982912   ;;  %vm971_vm14 = vcmask (%p192_p10), 1048512  }
  0x7f   : > { %v317_v46 = vld [vmem:[%s1915_s28 + $0x80] sm:$0xff]  ;;  %vm1526_vm15 = vcmask (%p192_p10), 1041409   ;;  %p1662_p0 = por (%p192_p10), %p1661_p13, %p1660_p12 }
  0x80   : > { %v225_v12 = vrot.slane %v209_v9, %v208_v8  ;;  %v217_v13 = vcombine.high %v209_v9, %v209_v9  ;;  %v232_v14 = vrot.slane %v216_v11, %v208_v8  ;;  %v218_v15 = vcombine.high %v216_v11, %v216_v11  ;;  %v318_v47 = vld [vmem:[%s1915_s28 + $0x100] sm:$0xff] }
  0x81   : > { %v321_v56 = vld [vmem:[%s1915_s28 + $0x280] sm:$0xff]  ;;  %p1663_p1 = pnand (%p192_p10), %p1662_p0, %p1656_p11 }
  0x82   : > { %v254_v17 = vrot.slane %v225_v12, %v253_v10  ;;  %v239_v18 = vrot.slane %v217_v13, %v208_v8  ;;  %v247_v19 = vcombine.high %v225_v12, %v225_v12  ;;  %v270_v20 = vrot.slane %v232_v14, %v253_v10  ;;  %v322_v57 = vld [vmem:[%s1915_s28 + $0x300] sm:$0xff] }
  0x83   : > { %v246_v22 = vrot.slane %v218_v15, %v208_v8  ;;  %v248_v23 = vcombine.high %v232_v14, %v232_v14  ;;  %v319_v58 = vld [vmem:[%s1915_s28 + $0x180] sm:$0xff] }
  0x84   : > { %v291_v24 = vsub.f32 %v254_v17, %v198_v16  ;;  %v258_v25 = vrot.slane %v239_v18, %v253_v10  ;;  %v262_v26 = vrot.slane %v247_v19, %v253_v10  ;;  %v249_v27 = vcombine.high %v239_v18, %v239_v18  ;;  %v323_v4 = vld [vmem:[%s1915_s28 + $0x380] sm:$0xff] }
  0x85   : > { %v295_v28 = vsub.f32 %v270_v20, %v198_v16  ;;  %v274_v29 = vrot.slane %v246_v22, %v253_v10  ;;  %v278_v30 = vrot.slane %v248_v23, %v253_v10  ;;  %v250_v31 = vcombine.high %v246_v22, %v246_v22 }
  0x86   : > { %v299_v32 = vmul.f32 %v291_v24, %v200_v21  ;;  %v292_v33 = vsub.f32 %v258_v25, %v198_v16  ;;  %v293_v34 = vsub.f32 %v262_v26, %v198_v16  ;;  %v266_v35 = vrot.slane %v249_v27, %v253_v10 }
  0x87   : > { %v303_v37 = vmul.f32 %v295_v28, %v200_v21  ;;  %v296_v38 = vsub.f32 %v274_v29, %v198_v16  ;;  %v297_v39 = vsub.f32 %v278_v30, %v198_v16  ;;  %v282_v40 = vrot.slane %v250_v31, %v253_v10 }
  0x88   : > { %v307_v41 = vand.u32 2147483647, %v299_v32  ;;  %v300_v42 = vmul.f32 %v292_v33, %v200_v21  ;;  %v301_v43 = vmul.f32 %v293_v34, %v200_v21  ;;  %v294_v44 = vsub.f32 %v266_v35, %v198_v16 }
  0x89   : > { %v311_v48 = vand.u32 2147483647, %v303_v37  ;;  %v304_v49 = vmul.f32 %v296_v38, %v200_v21  ;;  %v305_v50 = vmul.f32 %v297_v39, %v200_v21  ;;  %v298_v51 = vsub.f32 %v282_v40, %v198_v16 }
  0x8a   : > { %v324_v52 = vmax.f32 %v316_v36, %v307_v41  ;;  %v308_v53 = vand.u32 2147483647, %v300_v42  ;;  %v309_v54 = vand.u32 2147483647, %v301_v43  ;;  %v302_v55 = vmul.f32 %v294_v44, %v200_v21 }
  0x8b   : > { %v328_v59 = vmax.f32 %v320_v45, %v311_v48  ;;  %v312_v60 = vand.u32 2147483647, %v304_v49  ;;  %v313_v61 = vand.u32 2147483647, %v305_v50  ;;  %v306_v62 = vmul.f32 %v298_v51, %v200_v21  ;;  %194 = sbr.rel (!%p192_p10) target bundleno = 119 (0x77), region = 66 }
  0x8c   : > { %332 = vst [vmem:[%s1915_s28] sm:$0xff] %v324_v52  ;;  %v325_v63 = vmax.f32 %v317_v46, %v308_v53  ;;  %v326_v0 = vmax.f32 %v318_v47, %v309_v54  ;;  %v310_v3 = vand.u32 2147483647, %v302_v55 }
  0x8d   : > { %336 = vst [vmem:[%s1915_s28 + $0x200] sm:$0xff] %v328_v59  ;;  %v329_v6 = vmax.f32 %v321_v56, %v312_v60  ;;  %v330_v7 = vmax.f32 %v322_v57, %v313_v61  ;;  %v314_v8 = vand.u32 2147483647, %v306_v62 }
  0x8e   : > { %333 = vst [vmem:[%s1915_s28 + $0x80] sm:$0xff] %v325_v63  ;;  %334 = vst [vmem:[%s1915_s28 + $0x100] sm:$0xff] %v326_v0  ;;  %v327_v9 = vmax.f32 %v319_v58, %v310_v3 }
  0x8f   : > { %337 = vst [vmem:[%s1915_s28 + $0x280] sm:$0xff] %v329_v6  ;;  %338 = vst [vmem:[%s1915_s28 + $0x300] sm:$0xff] %v330_v7  ;;  %v331_v10 = vmax.f32 %v323_v4, %v314_v8 }
  0x90   : > { %335 = vst [vmem:[%s1915_s28 + $0x180] sm:$0xff] %v327_v9 }
  0x91   : > { %339 = vst [vmem:[%s1915_s28 + $0x380] sm:$0xff] %v331_v10 }
  0x98   :  { %v345_v11 = vld [vmem:[#allocation2 + $0x10] sm:$0xff]  ;;  %v343_v12 = vld [vmem:[#allocation2] sm:$0xff]  ;;  %v346_v13 = vld [vmem:[#allocation2 + $0x18] sm:$0xff] }
  0x99   :  { %475 = vmax.xlane.f32.xlu1 %v345_v11  ;;  %471 = vmax.xlane.f32.xlu0 %v343_v12  ;;  %v344_v14 = vld [vmem:[#allocation2 + $0x8] sm:$0xff]  ;;  %v347_v16 = vld [vmem:[#allocation2 + $0x20] sm:$0xff]  ;;  %v350_v17 = vld [vmem:[#allocation2 + $0x38] sm:$0xff] }
  0x9a   :  { %v348_v15 = vld [vmem:[#allocation2 + $0x28] sm:$0xff]  ;;  %v349_v18 = vld [vmem:[#allocation2 + $0x30] sm:$0xff]  ;;  %v351_v20 = vld [vmem:[#allocation2 + $0x40] sm:$0xff] }
  0x9b   :  { %v352_v19 = vld [vmem:[#allocation2 + $0x48] sm:$0xff]  ;;  %v354_v1 = vld [vmem:[#allocation2 + $0x58] sm:$0xff]  ;;  %v353_v21 = vld [vmem:[#allocation2 + $0x50] sm:$0xff] }
  0x9c   :  { %v356_v22 = vld [vmem:[#allocation2 + $0x68] sm:$0xff]  ;;  %v355_v23 = vld [vmem:[#allocation2 + $0x60] sm:$0xff]  ;;  %v358_v24 = vld [vmem:[#allocation2 + $0x78] sm:$0xff] }
  0x9d   :  { %477 = vmax.xlane.f32.xlu1 %v346_v13  ;;  %473 = vmax.xlane.f32.xlu0 %v344_v14  ;;  %v357_v25 = vld [vmem:[#allocation2 + $0x70] sm:$0xff]  ;;  %v360_v26 = vld [vmem:[#allocation2 + $0x88] sm:$0xff]  ;;  %v359_v27 = vld [vmem:[#allocation2 + $0x80] sm:$0xff] }
  0x9e   :  { %v362_v28 = vld [vmem:[#allocation2 + $0x98] sm:$0xff]  ;;  %v361_v29 = vld [vmem:[#allocation2 + $0x90] sm:$0xff]  ;;  %v364_v30 = vld [vmem:[#allocation2 + $0xa8] sm:$0xff] }
  0x9f   :  { %v363_v31 = vld [vmem:[#allocation2 + $0xa0] sm:$0xff]  ;;  %v366_v32 = vld [vmem:[#allocation2 + $0xb8] sm:$0xff]  ;;  %v365_v33 = vld [vmem:[#allocation2 + $0xb0] sm:$0xff] }
  0xa0   :  { %v368_v34 = vld [vmem:[#allocation2 + $0xc8] sm:$0xff]  ;;  %v367_v35 = vld [vmem:[#allocation2 + $0xc0] sm:$0xff]  ;;  %v370_v36 = vld [vmem:[#allocation2 + $0xd8] sm:$0xff] }
  0xa1   :  { %481 = vmax.xlane.f32.xlu1 %v348_v15  ;;  %479 = vmax.xlane.f32.xlu0 %v347_v16  ;;  %v369_v37 = vld [vmem:[#allocation2 + $0xd0] sm:$0xff]  ;;  %v372_v38 = vld [vmem:[#allocation2 + $0xe8] sm:$0xff]  ;;  %v371_v39 = vld [vmem:[#allocation2 + $0xe0] sm:$0xff] }
  0xa2   :  { %v374_v40 = vld [vmem:[#allocation2 + $0xf8] sm:$0xff]  ;;  %v373_v41 = vld [vmem:[#allocation2 + $0xf0] sm:$0xff]  ;;  %v376_v42 = vld [vmem:[#allocation2 + $0x108] sm:$0xff] }
  0xa3   :  { %v375_v43 = vld [vmem:[#allocation2 + $0x100] sm:$0xff]  ;;  %v378_v44 = vld [vmem:[#allocation2 + $0x118] sm:$0xff]  ;;  %v377_v45 = vld [vmem:[#allocation2 + $0x110] sm:$0xff] }
  0xa4   :  { %v380_v46 = vld [vmem:[#allocation2 + $0x128] sm:$0xff]  ;;  %v379_v47 = vld [vmem:[#allocation2 + $0x120] sm:$0xff]  ;;  %v382_v48 = vld [vmem:[#allocation2 + $0x138] sm:$0xff] }
  0xa5   :  { %485 = vmax.xlane.f32.xlu1 %v350_v17  ;;  %483 = vmax.xlane.f32.xlu0 %v349_v18  ;;  %v381_v49 = vld [vmem:[#allocation2 + $0x130] sm:$0xff]  ;;  %v384_v50 = vld [vmem:[#allocation2 + $0x148] sm:$0xff]  ;;  %v383_v51 = vld [vmem:[#allocation2 + $0x140] sm:$0xff] }
  0xa6   :  { %v386_v52 = vld [vmem:[#allocation2 + $0x158] sm:$0xff]  ;;  %v385_v53 = vld [vmem:[#allocation2 + $0x150] sm:$0xff]  ;;  %v388_v54 = vld [vmem:[#allocation2 + $0x168] sm:$0xff] }
  0xa7   :  { %v387_v55 = vld [vmem:[#allocation2 + $0x160] sm:$0xff]  ;;  %v390_v56 = vld [vmem:[#allocation2 + $0x178] sm:$0xff]  ;;  %v389_v57 = vld [vmem:[#allocation2 + $0x170] sm:$0xff] }
  0xa8   :  { %v392_v58 = vld [vmem:[#allocation2 + $0x188] sm:$0xff]  ;;  %v391_v59 = vld [vmem:[#allocation2 + $0x180] sm:$0xff]  ;;  %v394_v60 = vld [vmem:[#allocation2 + $0x198] sm:$0xff] }
  0xa9   :  { %489 = vmax.xlane.f32.xlu1 %v352_v19  ;;  %487 = vmax.xlane.f32.xlu0 %v351_v20  ;;  %v393_v61 = vld [vmem:[#allocation2 + $0x190] sm:$0xff]  ;;  %v396_v62 = vld [vmem:[#allocation2 + $0x1a8] sm:$0xff]  ;;  %v395_v63 = vld [vmem:[#allocation2 + $0x1a0] sm:$0xff]  ;;  %v1937_v19 = vand.u32 127, %v206_v2 }
  0xaa   :  { %v398_v0 = vld [vmem:[#allocation2 + $0x1b8] sm:$0xff]  ;;  %v397_v3 = vld [vmem:[#allocation2 + $0x1b0] sm:$0xff]  ;;  %v400_v4 = vld [vmem:[#allocation2 + $0x1c8] sm:$0xff] }
  0xab   :  { %v399_v6 = vld [vmem:[#allocation2 + $0x1c0] sm:$0xff]  ;;  %v402_v7 = vld [vmem:[#allocation2 + $0x1d8] sm:$0xff]  ;;  %v401_v8 = vld [vmem:[#allocation2 + $0x1d0] sm:$0xff]  ;;  %v889_v2 = vadd.s32 4294967264, %v1937_v19 }
  0xac   :  { %v404_v9 = vld [vmem:[#allocation2 + $0x1e8] sm:$0xff]  ;;  %v403_v10 = vld [vmem:[#allocation2 + $0x1e0] sm:$0xff]  ;;  %v406_v11 = vld [vmem:[#allocation2 + $0x1f8] sm:$0xff] }
  0xad   :  { %493 = vmax.xlane.f32.xlu1 %v354_v1  ;;  %491 = vmax.xlane.f32.xlu0 %v353_v21  ;;  %v405_v12 = vld [vmem:[#allocation2 + $0x1f0] sm:$0xff]  ;;  %v408_v13 = vld [vmem:[#allocation2 + $0x208] sm:$0xff]  ;;  %v407_v14 = vld [vmem:[#allocation2 + $0x200] sm:$0xff]  ;;  %v882_v21 = vadd.s32 4294967272, %v1937_v19 }
  0xae   :  { %v410_v15 = vld [vmem:[#allocation2 + $0x218] sm:$0xff]  ;;  %v409_v16 = vld [vmem:[#allocation2 + $0x210] sm:$0xff]  ;;  %v412_v17 = vld [vmem:[#allocation2 + $0x228] sm:$0xff] }
  0xaf   :  { %v411_v18 = vld [vmem:[#allocation2 + $0x220] sm:$0xff]  ;;  %v414_v20 = vld [vmem:[#allocation2 + $0x238] sm:$0xff]  ;;  %v413_v1 = vld [vmem:[#allocation2 + $0x230] sm:$0xff] }
  0xb1   :  { %497 = vmax.xlane.f32.xlu1 %v356_v22  ;;  %495 = vmax.xlane.f32.xlu0 %v355_v23  ;;  %v868_v22 = vadd.s32 4294967288, %v1937_v19  ;;  %v875_v23 = vadd.s32 4294967280, %v1937_v19 }
  0xb5   :  { %501 = vmax.xlane.f32.xlu1 %v358_v24  ;;  %499 = vmax.xlane.f32.xlu0 %v357_v25 }
  0xb9   :  { %505 = vmax.xlane.f32.xlu1 %v360_v26  ;;  %503 = vmax.xlane.f32.xlu0 %v359_v27  ;;  %v416_v26 = vld [vmem:[#allocation2 + $0x248] sm:$0xff]  ;;  %v415_v27 = vld [vmem:[#allocation2 + $0x240] sm:$0xff] }
  0xbd   :  { %509 = vmax.xlane.f32.xlu1 %v362_v28  ;;  %507 = vmax.xlane.f32.xlu0 %v361_v29  ;;  %v896_v28 = vadd.s32 4294967256, %v1937_v19  ;;  %v1946_v29 = vsub.s32 %v1937_v19, %v1902_v5 }
  0xc1   :  { %513 = vmax.xlane.f32.xlu1 %v364_v30  ;;  %511 = vmax.xlane.f32.xlu0 %v363_v31  ;;  %v1949_v30 = vsub.s32 %v882_v21, %v1902_v5  ;;  %v1952_v31 = vsub.s32 %v868_v22, %v1902_v5 }
  0xc5   :  { %517 = vmax.xlane.f32.xlu1 %v366_v32  ;;  %515 = vmax.xlane.f32.xlu0 %v365_v33  ;;  %v1955_v32 = vsub.s32 %v875_v23, %v1902_v5 }
  0xc9   :  { %521 = vmax.xlane.f32.xlu1 %v368_v34  ;;  %519 = vmax.xlane.f32.xlu0 %v367_v35  ;;  %v418_v35 = vld [vmem:[#allocation2 + $0x258] sm:$0xff] }
  0xcd   :  { %525 = vmax.xlane.f32.xlu1 %v370_v36  ;;  %523 = vmax.xlane.f32.xlu0 %v369_v37  ;;  %v417_v36 = vld [vmem:[#allocation2 + $0x250] sm:$0xff]  ;;  %v1958_v37 = vsub.s32 %v896_v28, %v1902_v5 }
  0xd1   :  { %529 = vmax.xlane.f32.xlu1 %v372_v38  ;;  %527 = vmax.xlane.f32.xlu0 %v371_v39  ;;  %v1961_v38 = vsub.s32 %v889_v2, %v1902_v5  ;;  %v903_v39 = vadd.s32 4294967248, %v1937_v19 }
  0xd5   :  { %533 = vmax.xlane.f32.xlu1 %v374_v40  ;;  %531 = vmax.xlane.f32.xlu0 %v373_v41 }
  0xd9   :  { %537 = vmax.xlane.f32.xlu1 %v376_v42  ;;  %535 = vmax.xlane.f32.xlu0 %v375_v43  ;;  %v910_v43 = vadd.s32 4294967240, %v1937_v19 }
  0xdd   :  { %541 = vmax.xlane.f32.xlu1 %v378_v44  ;;  %539 = vmax.xlane.f32.xlu0 %v377_v45 }
  0xe1   :  { %545 = vmax.xlane.f32.xlu1 %v380_v46  ;;  %543 = vmax.xlane.f32.xlu0 %v379_v47 }
  0xe5   :  { %549 = vmax.xlane.f32.xlu1 %v382_v48  ;;  %547 = vmax.xlane.f32.xlu0 %v381_v49  ;;  %v420_v49 = vld [vmem:[#allocation2 + $0x268] sm:$0xff] }
  0xe9   :  { %553 = vmax.xlane.f32.xlu1 %v384_v50  ;;  %551 = vmax.xlane.f32.xlu0 %v383_v51  ;;  %v419_v50 = vld [vmem:[#allocation2 + $0x260] sm:$0xff]  ;;  %v1972_v51 = vsub.s32 %v903_v39, %v1902_v5 }
  0xed   :  { %557 = vmax.xlane.f32.xlu1 %v386_v52  ;;  %555 = vmax.xlane.f32.xlu0 %v385_v53  ;;  %v924_v52 = vadd.s32 4294967224, %v1937_v19  ;;  %v917_v53 = vadd.s32 4294967232, %v1937_v19 }
  0xf1   :  { %561 = vmax.xlane.f32.xlu1 %v388_v54  ;;  %559 = vmax.xlane.f32.xlu0 %v387_v55 }
  0xf5   :  { %565 = vmax.xlane.f32.xlu1 %v390_v56  ;;  %563 = vmax.xlane.f32.xlu0 %v389_v57  ;;  %v1980_v57 = vsub.s32 %v910_v43, %v1902_v5  ;;  %v440_v43 = vld [vmem:[#allocation2 + $0x308] sm:$0xff] }
  0xf9   :  { %569 = vmax.xlane.f32.xlu1 %v392_v58  ;;  %567 = vmax.xlane.f32.xlu0 %v391_v59 }
  0xfd   :  { %573 = vmax.xlane.f32.xlu1 %v394_v60  ;;  %571 = vmax.xlane.f32.xlu0 %v393_v61 }
 0x101   :  { %577 = vmax.xlane.f32.xlu1 %v396_v62  ;;  %575 = vmax.xlane.f32.xlu0 %v395_v63  ;;  %v422_v62 = vld [vmem:[#allocation2 + $0x278] sm:$0xff]  ;;  %v421_v63 = vld [vmem:[#allocation2 + $0x270] sm:$0xff] }
 0x105   :  { %581 = vmax.xlane.f32.xlu1 %v398_v0  ;;  %579 = vmax.xlane.f32.xlu0 %v397_v3  ;;  %v1985_v0 = vsub.s32 %v924_v52, %v1902_v5  ;;  %v1988_v3 = vsub.s32 %v917_v53, %v1902_v5  ;;  %v455_v52 = vld [vmem:[#allocation2 + $0x380] sm:$0xff]  ;;  %v441_v53 = vld [vmem:[#allocation2 + $0x310] sm:$0xff] }
 0x109   :  { %585 = vmax.xlane.f32.xlu1 %v400_v4  ;;  %583 = vmax.xlane.f32.xlu0 %v399_v6 }
 0x10d   :  { %589 = vmax.xlane.f32.xlu1 %v402_v7  ;;  %587 = vmax.xlane.f32.xlu0 %v401_v8  ;;  %v938_v7 = vadd.s32 4294967208, %v1937_v19  ;;  %v931_v8 = vadd.s32 4294967216, %v1937_v19 }
 0x111   :  { %593 = vmax.xlane.f32.xlu1 %v404_v9  ;;  %591 = vmax.xlane.f32.xlu0 %v403_v10 }
 0x115   :  { %597 = vmax.xlane.f32.xlu1 %v406_v11  ;;  %595 = vmax.xlane.f32.xlu0 %v405_v12 }
 0x119   :  { %601 = vmax.xlane.f32.xlu1 %v408_v13  ;;  %599 = vmax.xlane.f32.xlu0 %v407_v14  ;;  %v424_v13 = vld [vmem:[#allocation2 + $0x288] sm:$0xff]  ;;  %v423_v14 = vld [vmem:[#allocation2 + $0x280] sm:$0xff] }
 0x11d   :  { %605 = vmax.xlane.f32.xlu1 %v410_v15  ;;  %603 = vmax.xlane.f32.xlu0 %v409_v16  ;;  %v952_v15 = vadd.s32 4294967192, %v1937_v19  ;;  %v945_v16 = vadd.s32 4294967200, %v1937_v19 }
 0x11f   :  { %v2012_v28 = vsub.s32 %v945_v16, %v1902_v5  ;;  %v443_v16 = vld [vmem:[#allocation2 + $0x320] sm:$0xff] }
 0x121   :  { %609 = vmax.xlane.f32.xlu1 %v412_v17  ;;  %607 = vmax.xlane.f32.xlu0 %v411_v18 }
 0x125   :  { %613 = vmax.xlane.f32.xlu1 %v414_v20  ;;  %611 = vmax.xlane.f32.xlu0 %v413_v1  ;;  %v2001_v20 = vsub.s32 %v938_v7, %v1902_v5  ;;  %v2004_v1 = vsub.s32 %v931_v8, %v1902_v5  ;;  %v457_v8 = vld [vmem:[#allocation2 + $0x390] sm:$0xff] }
 0x126   :  { %v476_v24 = vpop.xlane.xlu1 %475  ;;  %v472_v25 = vpop.xlane.xlu0 %471 }
 0x127   :  { %v867_v40 = vrot.slane %v472_v25, %v1946_v29  ;;  %v879_v44 = vrot.slane %v476_v24, %v1955_v32  ;;  %v439_v25 = vld [vmem:[#allocation2 + $0x300] sm:$0xff] }
 0x129   :  { %617 = vmax.xlane.f32.xlu1 %v416_v26  ;;  %615 = vmax.xlane.f32.xlu0 %v415_v27  ;;  %v425_v26 = vld [vmem:[#allocation2 + $0x290] sm:$0xff]  ;;  %v2009_v27 = vsub.s32 %v952_v15, %v1902_v5 }
 0x12a   :  { %v478_v33 = vpop.xlane.xlu1 %477  ;;  %v474_v34 = vpop.xlane.xlu0 %473 }
 0x12b   :  { %v886_v41 = vrot.slane %v478_v33, %v1949_v30  ;;  %v872_v42 = vrot.slane %v474_v34, %v1952_v31  ;;  %v966_v34 = vadd.s32 4294967176, %v1937_v19 }
 0x12d   :  { %v874_v45 = vsel %vm873_vm0, %v872_v42, %v867_v40  ;;  %621 = vmax.xlane.f32.xlu1 %v418_v35  ;;  %619 = vmax.xlane.f32.xlu0 %v417_v36  ;;  %v959_v35 = vadd.s32 4294967184, %v1937_v19  ;;  %v426_v42 = vld [vmem:[#allocation2 + $0x298] sm:$0xff] }
 0x12e   :  { %v881_v46 = vsel %vm880_vm1, %v879_v44, %v874_v45  ;;  %v482_v47 = vpop.xlane.xlu1 %481  ;;  %v480_v48 = vpop.xlane.xlu0 %479 }
 0x12f   :  { %v900_v54 = vrot.slane %v482_v47, %v1958_v37  ;;  %v888_v55 = vsel %vm887_vm2, %v886_v41, %v881_v46  ;;  %v893_v56 = vrot.slane %v480_v48, %v1961_v38  ;;  %v2023_v46 = vsub.s32 %v966_v34, %v1902_v5 }
 0x130   :  { %v2026_v19 = vsub.s32 %v959_v35, %v1902_v5 }
 0x131   :  { %v895_v58 = vsel %vm894_vm3, %v893_v56, %v888_v55  ;;  %625 = vmax.xlane.f32.xlu1 %v420_v49  ;;  %623 = vmax.xlane.f32.xlu0 %v419_v50 }
 0x132   :  { %v486_v59 = vpop.xlane.xlu1 %485  ;;  %v902_v60 = vsel %vm901_vm4, %v900_v54, %v895_v58  ;;  %v484_v61 = vpop.xlane.xlu0 %483 }
 0x133   :  { %v914_v4 = vrot.slane %v486_v59, %v1980_v57  ;;  %v907_v6 = vrot.slane %v484_v61, %v1972_v51  ;;  %v456_v61 = vld [vmem:[#allocation2 + $0x388] sm:$0xff] }
 0x135   :  { %v909_v9 = vsel %vm908_vm5, %v907_v6, %v902_v60  ;;  %629 = vmax.xlane.f32.xlu1 %v422_v62  ;;  %627 = vmax.xlane.f32.xlu0 %v421_v63  ;;  %v427_v60 = vld [vmem:[#allocation2 + $0x2a0] sm:$0xff] }
 0x136   :  { %v490_v10 = vpop.xlane.xlu1 %489  ;;  %v916_v11 = vsel %vm915_vm6, %v914_v4, %v909_v9  ;;  %v488_v12 = vpop.xlane.xlu0 %487  ;;  %v442_v9 = vld [vmem:[#allocation2 + $0x318] sm:$0xff] }
 0x137   :  { %v928_v17 = vrot.slane %v490_v10, %v1985_v0  ;;  %v921_v18 = vrot.slane %v488_v12, %v1988_v3 }
 0x139   :  { %v923_v21 = vsel %vm922_vm7, %v921_v18, %v916_v11  ;;  %633 = vmax.xlane.f32.xlu1 %v424_v13  ;;  %631 = vmax.xlane.f32.xlu0 %v423_v14 }
 0x13a   :  { %v494_v22 = vpop.xlane.xlu1 %493  ;;  %v930_v23 = vsel %vm929_vm8, %v928_v17, %v923_v21  ;;  %v492_v24 = vpop.xlane.xlu0 %491  ;;  %v428_v17 = vld [vmem:[#allocation2 + $0x2a8] sm:$0xff] }
 0x13b   :  { %v942_v2 = vrot.slane %v494_v22, %v2001_v20  ;;  %v935_v33 = vrot.slane %v492_v24, %v2004_v1 }
 0x13d   :  { %v937_v36 = vsel %vm936_vm9, %v935_v33, %v930_v23  ;;  %663 = vmax.xlane.f32.xlu1 %v439_v25  ;;  %635 = vmax.xlane.f32.xlu0 %v425_v26  ;;  %v429_v26 = vld [vmem:[#allocation2 + $0x2b0] sm:$0xff] }
 0x13e   :  { %v498_v39 = vpop.xlane.xlu1 %497  ;;  %v944_v40 = vsel %vm943_vm10, %v942_v2, %v937_v36  ;;  %v496_v41 = vpop.xlane.xlu0 %495  ;;  %v458_v2 = vld [vmem:[#allocation2 + $0x398] sm:$0xff] }
 0x13f   :  { %v956_v44 = vrot.slane %v498_v39, %v2009_v27  ;;  %v949_v45 = vrot.slane %v496_v41, %v2012_v28  ;;  %v459_v41 = vld [vmem:[#allocation2 + $0x3a0] sm:$0xff] }
 0x141   :  { %v951_v47 = vsel %vm950_vm11, %v949_v45, %v944_v40  ;;  %637 = vmax.xlane.f32.xlu1 %v426_v42  ;;  %665 = vmax.xlane.f32.xlu0 %v440_v43  ;;  %v444_v42 = vld [vmem:[#allocation2 + $0x328] sm:$0xff] }
 0x142   :  { %v502_v48 = vpop.xlane.xlu1 %501  ;;  %v958_v49 = vsel %vm957_vm12, %v956_v44, %v951_v47  ;;  %v500_v50 = vpop.xlane.xlu0 %499 }
 0x143   :  { %v970_v54 = vrot.slane %v502_v48, %v2023_v46  ;;  %v963_v55 = vrot.slane %v500_v50, %v2026_v19  ;;  %v445_v50 = vld [vmem:[#allocation2 + $0x330] sm:$0xff] }
 0x145   :  { %v965_v56 = vsel %vm964_vm13, %v963_v55, %v958_v49  ;;  %695 = vmax.xlane.f32.xlu1 %v455_v52  ;;  %667 = vmax.xlane.f32.xlu0 %v441_v53  ;;  %v430_v52 = vld [vmem:[#allocation2 + $0x2b8] sm:$0xff] }
 0x146   :  { %v2034_v5 = vsel %vm971_vm14, %v970_v54, %v965_v56  ;;  %v506_v58 = vpop.xlane.xlu1 %505  ;;  %v504_v59 = vpop.xlane.xlu0 %503 }
 0x147   :  { %v980_v62 = vrot.slane %v506_v58, %v1952_v31  ;;  %v976_v63 = vrot.slane %v504_v59, %v1946_v29 }
 0x149   :  { %v981_v4 = vsel %vm873_vm0, %v980_v62, %v976_v63  ;;  %639 = vmax.xlane.f32.xlu1 %v427_v60  ;;  %697 = vmax.xlane.f32.xlu0 %v456_v61  ;;  %v431_v60 = vld [vmem:[#allocation2 + $0x2c0] sm:$0xff]  ;;  %v460_v61 = vld [vmem:[#allocation2 + $0x3a8] sm:$0xff] }
 0x14a   :  { %v510_v6 = vpop.xlane.xlu1 %509  ;;  %v508_v7 = vpop.xlane.xlu0 %507 }
 0x14b   :  { %v990_v10 = vrot.slane %v510_v6, %v1949_v30  ;;  %v985_v11 = vrot.slane %v508_v7, %v1955_v32 }
 0x14d   :  { %v986_v12 = vsel %vm880_vm1, %v985_v11, %v981_v4  ;;  %699 = vmax.xlane.f32.xlu1 %v457_v8  ;;  %669 = vmax.xlane.f32.xlu0 %v442_v9  ;;  %v461_v9 = vld [vmem:[#allocation2 + $0x3b0] sm:$0xff] }
 0x14e   :  { %v514_v13 = vpop.xlane.xlu1 %513  ;;  %v991_v14 = vsel %vm887_vm2, %v990_v10, %v986_v12  ;;  %v512_v15 = vpop.xlane.xlu0 %511  ;;  %v446_v10 = vld [vmem:[#allocation2 + $0x338] sm:$0xff] }
 0x14f   :  { %v1000_v18 = vrot.slane %v514_v13, %v1958_v37  ;;  %v995_v21 = vrot.slane %v512_v15, %v1961_v38 }
 0x151   :  { %v996_v22 = vsel %vm894_vm3, %v995_v21, %v991_v14  ;;  %671 = vmax.xlane.f32.xlu1 %v443_v16  ;;  %641 = vmax.xlane.f32.xlu0 %v428_v17  ;;  %v447_v17 = vld [vmem:[#allocation2 + $0x340] sm:$0xff] }
 0x152   :  { %v518_v23 = vpop.xlane.xlu1 %517  ;;  %v1001_v24 = vsel %vm901_vm4, %v1000_v18, %v996_v22  ;;  %v516_v25 = vpop.xlane.xlu0 %515  ;;  %v432_v18 = vld [vmem:[#allocation2 + $0x2c8] sm:$0xff] }
 0x153   :  { %v1010_v33 = vrot.slane %v518_v23, %v1980_v57  ;;  %v1005_v34 = vrot.slane %v516_v25, %v1972_v51 }
 0x155   :  { %v1006_v35 = vsel %vm908_vm5, %v1005_v34, %v1001_v24  ;;  %643 = vmax.xlane.f32.xlu1 %v429_v26  ;;  %701 = vmax.xlane.f32.xlu0 %v458_v2  ;;  %v433_v2 = vld [vmem:[#allocation2 + $0x2d0] sm:$0xff] }
 0x156   :  { %v522_v36 = vpop.xlane.xlu1 %521  ;;  %v1011_v39 = vsel %vm915_vm6, %v1010_v33, %v1006_v35  ;;  %v520_v40 = vpop.xlane.xlu0 %519  ;;  %v462_v33 = vld [vmem:[#allocation2 + $0x3b8] sm:$0xff] }
 0x157   :  { %v1020_v43 = vrot.slane %v522_v36, %v1985_v0  ;;  %v1015_v44 = vrot.slane %v520_v40, %v1988_v3 }
 0x159   :  { %v1016_v45 = vsel %vm922_vm7, %v1015_v44, %v1011_v39  ;;  %703 = vmax.xlane.f32.xlu1 %v459_v41  ;;  %673 = vmax.xlane.f32.xlu0 %v444_v42  ;;  %v463_v41 = vld [vmem:[#allocation2 + $0x3c0] sm:$0xff]  ;;  %v448_v42 = vld [vmem:[#allocation2 + $0x348] sm:$0xff] }
 0x15a   :  { %v526_v47 = vpop.xlane.xlu1 %525  ;;  %v1021_v48 = vsel %vm929_vm8, %v1020_v43, %v1016_v45  ;;  %v524_v49 = vpop.xlane.xlu0 %523 }
 0x15b   :  { %v1030_v53 = vrot.slane %v526_v47, %v2001_v20  ;;  %v1025_v54 = vrot.slane %v524_v49, %v2004_v1 }
 0x15d   :  { %v1026_v55 = vsel %vm936_vm9, %v1025_v54, %v1021_v48  ;;  %675 = vmax.xlane.f32.xlu1 %v445_v50  ;;  %645 = vmax.xlane.f32.xlu0 %v430_v52  ;;  %v449_v50 = vld [vmem:[#allocation2 + $0x350] sm:$0xff]  ;;  %v434_v52 = vld [vmem:[#allocation2 + $0x2d8] sm:$0xff] }
 0x15e   :  { %v530_v56 = vpop.xlane.xlu1 %529  ;;  %v1031_v58 = vsel %vm943_vm10, %v1030_v53, %v1026_v55  ;;  %v528_v59 = vpop.xlane.xlu0 %527 }
 0x15f   :  { %v1040_v62 = vrot.slane %v530_v56, %v2009_v27  ;;  %v1035_v63 = vrot.slane %v528_v59, %v2012_v28 }
 0x161   :  { %v1036_v4 = vsel %vm950_vm11, %v1035_v63, %v1031_v58  ;;  %647 = vmax.xlane.f32.xlu1 %v431_v60  ;;  %705 = vmax.xlane.f32.xlu0 %v460_v61  ;;  %v435_v60 = vld [vmem:[#allocation2 + $0x2e0] sm:$0xff]  ;;  %v464_v61 = vld [vmem:[#allocation2 + $0x3c8] sm:$0xff] }
 0x162   :  { %v534_v6 = vpop.xlane.xlu1 %533  ;;  %v1041_v7 = vsel %vm957_vm12, %v1040_v62, %v1036_v4  ;;  %v532_v8 = vpop.xlane.xlu0 %531 }
 0x163   :  { %v1050_v11 = vrot.slane %v534_v6, %v2023_v46  ;;  %v1045_v12 = vrot.slane %v532_v8, %v2026_v19 }
 0x165   :  { %v1046_v13 = vsel %vm964_vm13, %v1045_v12, %v1041_v7  ;;  %707 = vmax.xlane.f32.xlu1 %v461_v9  ;;  %677 = vmax.xlane.f32.xlu0 %v446_v10  ;;  %v465_v9 = vld [vmem:[#allocation2 + $0x3d0] sm:$0xff]  ;;  %v450_v10 = vld [vmem:[#allocation2 + $0x358] sm:$0xff] }
 0x166   :  { %v1051_v14 = vsel %vm971_vm14, %v1050_v11, %v1046_v13  ;;  %v538_v15 = vpop.xlane.xlu1 %537  ;;  %v536_v16 = vpop.xlane.xlu0 %535 }
 0x167   :  { %v2068_v21 = vsel %vm1526_vm15, %v1051_v14, %v2034_v5  ;;  %v1059_v22 = vrot.slane %v538_v15, %v1952_v31  ;;  %v1055_v23 = vrot.slane %v536_v16, %v1946_v29  ;;  %vm1528_vm15 = vcmask 1042434  }
 0x169   :  { %v1060_v24 = vsel %vm873_vm0, %v1059_v22, %v1055_v23  ;;  %679 = vmax.xlane.f32.xlu1 %v447_v17  ;;  %649 = vmax.xlane.f32.xlu0 %v432_v18  ;;  %v451_v17 = vld [vmem:[#allocation2 + $0x360] sm:$0xff]  ;;  %v436_v18 = vld [vmem:[#allocation2 + $0x2e8] sm:$0xff] }
 0x16a   :  { %v542_v25 = vpop.xlane.xlu1 %541  ;;  %v540_v26 = vpop.xlane.xlu0 %539 }
 0x16b   :  { %v1069_v34 = vrot.slane %v542_v25, %v1949_v30  ;;  %v1064_v35 = vrot.slane %v540_v26, %v1955_v32 }
 0x16d   :  { %v1065_v36 = vsel %vm880_vm1, %v1064_v35, %v1060_v24  ;;  %651 = vmax.xlane.f32.xlu1 %v433_v2  ;;  %709 = vmax.xlane.f32.xlu0 %v462_v33  ;;  %v437_v33 = vld [vmem:[#allocation2 + $0x2f0] sm:$0xff] }
 0x16e   :  { %v546_v5 = vpop.xlane.xlu1 %545  ;;  %v1070_v39 = vsel %vm887_vm2, %v1069_v34, %v1065_v36  ;;  %v544_v40 = vpop.xlane.xlu0 %543  ;;  %v466_v34 = vld [vmem:[#allocation2 + $0x3d8] sm:$0xff] }
 0x16f   :  { %v1079_v43 = vrot.slane %v546_v5, %v1958_v37  ;;  %v1074_v44 = vrot.slane %v544_v40, %v1961_v38 }
 0x171   :  { %v1075_v45 = vsel %vm894_vm3, %v1074_v44, %v1070_v39  ;;  %711 = vmax.xlane.f32.xlu1 %v463_v41  ;;  %681 = vmax.xlane.f32.xlu0 %v448_v42  ;;  %v467_v42 = vld [vmem:[#allocation2 + $0x3e0] sm:$0xff] }
 0x172   :  { %v550_v47 = vpop.xlane.xlu1 %549  ;;  %v1080_v48 = vsel %vm901_vm4, %v1079_v43, %v1075_v45  ;;  %v548_v49 = vpop.xlane.xlu0 %547  ;;  %v452_v43 = vld [vmem:[#allocation2 + $0x368] sm:$0xff] }
 0x173   :  { %v1089_v53 = vrot.slane %v550_v47, %v1980_v57  ;;  %v1084_v54 = vrot.slane %v548_v49, %v1972_v51 }
 0x175   :  { %v1085_v55 = vsel %vm908_vm5, %v1084_v54, %v1080_v48  ;;  %683 = vmax.xlane.f32.xlu1 %v449_v50  ;;  %653 = vmax.xlane.f32.xlu0 %v434_v52  ;;  %v453_v52 = vld [vmem:[#allocation2 + $0x370] sm:$0xff] }
 0x176   :  { %v554_v56 = vpop.xlane.xlu1 %553  ;;  %v1090_v58 = vsel %vm915_vm6, %v1089_v53, %v1085_v55  ;;  %v552_v59 = vpop.xlane.xlu0 %551  ;;  %v438_v53 = vld [vmem:[#allocation2 + $0x2f8] sm:$0xff] }
 0x177   :  { %v1099_v62 = vrot.slane %v554_v56, %v1985_v0  ;;  %v1094_v63 = vrot.slane %v552_v59, %v1988_v3 }
 0x179   :  { %v1095_v4 = vsel %vm922_vm7, %v1094_v63, %v1090_v58  ;;  %655 = vmax.xlane.f32.xlu1 %v435_v60  ;;  %713 = vmax.xlane.f32.xlu0 %v464_v61  ;;  %v454_v60 = vld [vmem:[#allocation2 + $0x378] sm:$0xff]  ;;  %v468_v61 = vld [vmem:[#allocation2 + $0x3e8] sm:$0xff] }
 0x17a   :  { %v558_v6 = vpop.xlane.xlu1 %557  ;;  %v1100_v7 = vsel %vm929_vm8, %v1099_v62, %v1095_v4  ;;  %v556_v8 = vpop.xlane.xlu0 %555 }
 0x17b   :  { %v1109_v11 = vrot.slane %v558_v6, %v2001_v20  ;;  %v1104_v12 = vrot.slane %v556_v8, %v2004_v1 }
 0x17d   :  { %v1105_v13 = vsel %vm936_vm9, %v1104_v12, %v1100_v7  ;;  %715 = vmax.xlane.f32.xlu1 %v465_v9  ;;  %685 = vmax.xlane.f32.xlu0 %v450_v10  ;;  %v469_v9 = vld [vmem:[#allocation2 + $0x3f0] sm:$0xff]  ;;  %v470_v10 = vld [vmem:[#allocation2 + $0x3f8] sm:$0xff] }
 0x17e   :  { %v562_v14 = vpop.xlane.xlu1 %561  ;;  %v1110_v15 = vsel %vm943_vm10, %v1109_v11, %v1105_v13  ;;  %v560_v16 = vpop.xlane.xlu0 %559 }
 0x17f   :  { %v1119_v22 = vrot.slane %v562_v14, %v2009_v27  ;;  %v1114_v23 = vrot.slane %v560_v16, %v2012_v28 }
 0x181   :  { %v1115_v24 = vsel %vm950_vm11, %v1114_v23, %v1110_v15  ;;  %687 = vmax.xlane.f32.xlu1 %v451_v17  ;;  %657 = vmax.xlane.f32.xlu0 %v436_v18 }
 0x182   :  { %v566_v25 = vpop.xlane.xlu1 %565  ;;  %v1120_v26 = vsel %vm957_vm12, %v1119_v22, %v1115_v24  ;;  %v564_v2 = vpop.xlane.xlu0 %563 }
 0x183   :  { %v1129_v35 = vrot.slane %v566_v25, %v2023_v46  ;;  %v1124_v36 = vrot.slane %v564_v2, %v2026_v19 }
 0x185   :  { %v1125_v5 = vsel %vm964_vm13, %v1124_v36, %v1120_v26  ;;  %659 = vmax.xlane.f32.xlu1 %v437_v33  ;;  %717 = vmax.xlane.f32.xlu0 %v466_v34 }
 0x186   :  { %v1130_v39 = vsel %vm971_vm14, %v1129_v35, %v1125_v5  ;;  %v570_v40 = vpop.xlane.xlu1 %569  ;;  %v568_v41 = vpop.xlane.xlu0 %567 }
 0x187   :  { %v2102_v44 = vsel %vm1528_vm15, %v1130_v39, %v2068_v21  ;;  %v1138_v45 = vrot.slane %v570_v40, %v1952_v31  ;;  %v1134_v47 = vrot.slane %v568_v41, %v1946_v29  ;;  %vm1530_vm15 = vcmask 1043459  }
 0x189   :  { %v1139_v48 = vsel %vm873_vm0, %v1138_v45, %v1134_v47  ;;  %719 = vmax.xlane.f32.xlu1 %v467_v42  ;;  %689 = vmax.xlane.f32.xlu0 %v452_v43 }
 0x18a   :  { %v574_v49 = vpop.xlane.xlu1 %573  ;;  %v572_v50 = vpop.xlane.xlu0 %571 }
 0x18b   :  { %v1148_v54 = vrot.slane %v574_v49, %v1949_v30  ;;  %v1143_v55 = vrot.slane %v572_v50, %v1955_v32 }
 0x18d   :  { %v1144_v56 = vsel %vm880_vm1, %v1143_v55, %v1139_v48  ;;  %691 = vmax.xlane.f32.xlu1 %v453_v52  ;;  %661 = vmax.xlane.f32.xlu0 %v438_v53 }
 0x18e   :  { %v578_v21 = vpop.xlane.xlu1 %577  ;;  %v1149_v58 = vsel %vm887_vm2, %v1148_v54, %v1144_v56  ;;  %v576_v59 = vpop.xlane.xlu0 %575 }
 0x18f   :  { %v1158_v62 = vrot.slane %v578_v21, %v1958_v37  ;;  %v1153_v63 = vrot.slane %v576_v59, %v1961_v38 }
 0x191   :  { %v1154_v4 = vsel %vm894_vm3, %v1153_v63, %v1149_v58  ;;  %693 = vmax.xlane.f32.xlu1 %v454_v60  ;;  %721 = vmax.xlane.f32.xlu0 %v468_v61 }
 0x192   :  { %v582_v6 = vpop.xlane.xlu1 %581  ;;  %v1159_v7 = vsel %vm901_vm4, %v1158_v62, %v1154_v4  ;;  %v580_v8 = vpop.xlane.xlu0 %579 }
 0x193   :  { %v1168_v11 = vrot.slane %v582_v6, %v1980_v57  ;;  %v1163_v12 = vrot.slane %v580_v8, %v1972_v51 }
 0x195   :  { %v1164_v13 = vsel %vm908_vm5, %v1163_v12, %v1159_v7  ;;  %723 = vmax.xlane.f32.xlu0 %v469_v9  ;;  %725 = vmax.xlane.f32.xlu1 %v470_v10 }
 0x196   :  { %v586_v14 = vpop.xlane.xlu1 %585  ;;  %v1169_v15 = vsel %vm915_vm6, %v1168_v11, %v1164_v13  ;;  %v584_v16 = vpop.xlane.xlu0 %583 }
 0x197   :  { %v1178_v17 = vrot.slane %v586_v14, %v1985_v0  ;;  %v1173_v18 = vrot.slane %v584_v16, %v1988_v3 }
 0x199   :  { %v1174_v22 = vsel %vm922_vm7, %v1173_v18, %v1169_v15 }
 0x19a   :  { %v590_v23 = vpop.xlane.xlu1 %589  ;;  %v1179_v24 = vsel %vm929_vm8, %v1178_v17, %v1174_v22  ;;  %v588_v25 = vpop.xlane.xlu0 %587 }
 0x19b   :  { %v1188_v26 = vrot.slane %v590_v23, %v2001_v20  ;;  %v1183_v2 = vrot.slane %v588_v25, %v2004_v1 }
 0x19d   :  { %v1184_v33 = vsel %vm936_vm9, %v1183_v2, %v1179_v24 }
 0x19e   :  { %v594_v34 = vpop.xlane.xlu1 %593  ;;  %v1189_v35 = vsel %vm943_vm10, %v1188_v26, %v1184_v33  ;;  %v592_v36 = vpop.xlane.xlu0 %591 }
 0x19f   :  { %v1198_v5 = vrot.slane %v594_v34, %v2009_v27  ;;  %v1193_v39 = vrot.slane %v592_v36, %v2012_v28 }
 0x1a1   :  { %v1194_v40 = vsel %vm950_vm11, %v1193_v39, %v1189_v35 }
 0x1a2   :  { %v598_v41 = vpop.xlane.xlu1 %597  ;;  %v1199_v42 = vsel %vm957_vm12, %v1198_v5, %v1194_v40  ;;  %v596_v43 = vpop.xlane.xlu0 %595 }
 0x1a3   :  { %v1208_v45 = vrot.slane %v598_v41, %v2023_v46  ;;  %v1203_v47 = vrot.slane %v596_v43, %v2026_v19 }
 0x1a5   :  { %v1204_v48 = vsel %vm964_vm13, %v1203_v47, %v1199_v42 }
 0x1a6   :  { %v1209_v49 = vsel %vm971_vm14, %v1208_v45, %v1204_v48  ;;  %v602_v50 = vpop.xlane.xlu1 %601  ;;  %v600_v52 = vpop.xlane.xlu0 %599 }
 0x1a7   :  { %v1531_v53 = vsel %vm1530_vm15, %v1209_v49, %v2102_v44  ;;  %v1217_v54 = vrot.slane %v602_v50, %v1952_v31  ;;  %v1213_v55 = vrot.slane %v600_v52, %v1946_v29  ;;  %vm1532_vm15 = vcmask 1044484  }
 0x1a9   :  { %v1218_v56 = vsel %vm873_vm0, %v1217_v54, %v1213_v55 }
 0x1aa   :  { %v606_v21 = vpop.xlane.xlu1 %605  ;;  %v604_v58 = vpop.xlane.xlu0 %603 }
 0x1ab   :  { %v1227_v59 = vrot.slane %v606_v21, %v1949_v30  ;;  %v1222_v60 = vrot.slane %v604_v58, %v1955_v32 }
 0x1ad   :  { %v1223_v61 = vsel %vm880_vm1, %v1222_v60, %v1218_v56 }
 0x1ae   :  { %v610_v62 = vpop.xlane.xlu1 %609  ;;  %v1228_v63 = vsel %vm887_vm2, %v1227_v59, %v1223_v61  ;;  %v608_v4 = vpop.xlane.xlu0 %607 }
 0x1af   :  { %v1237_v44 = vrot.slane %v610_v62, %v1958_v37  ;;  %v1232_v6 = vrot.slane %v608_v4, %v1961_v38 }
 0x1b1   :  { %v1233_v7 = vsel %vm894_vm3, %v1232_v6, %v1228_v63 }
 0x1b2   :  { %v614_v8 = vpop.xlane.xlu1 %613  ;;  %v1238_v9 = vsel %vm901_vm4, %v1237_v44, %v1233_v7  ;;  %v612_v10 = vpop.xlane.xlu0 %611 }
 0x1b3   :  { %v1247_v11 = vrot.slane %v614_v8, %v1980_v57  ;;  %v1242_v12 = vrot.slane %v612_v10, %v1972_v51 }
 0x1b5   :  { %v1243_v13 = vsel %vm908_vm5, %v1242_v12, %v1238_v9 }
 0x1b6   :  { %v618_v14 = vpop.xlane.xlu1 %617  ;;  %v1248_v15 = vsel %vm915_vm6, %v1247_v11, %v1243_v13  ;;  %v616_v16 = vpop.xlane.xlu0 %615 }
 0x1b7   :  { %v1257_v17 = vrot.slane %v618_v14, %v1985_v0  ;;  %v1252_v18 = vrot.slane %v616_v16, %v1988_v3 }
 0x1b9   :  { %v1253_v22 = vsel %vm922_vm7, %v1252_v18, %v1248_v15 }
 0x1ba   :  { %v622_v23 = vpop.xlane.xlu1 %621  ;;  %v1258_v24 = vsel %vm929_vm8, %v1257_v17, %v1253_v22  ;;  %v620_v25 = vpop.xlane.xlu0 %619 }
 0x1bb   :  { %v1267_v26 = vrot.slane %v622_v23, %v2001_v20  ;;  %v1262_v2 = vrot.slane %v620_v25, %v2004_v1 }
 0x1bd   :  { %v1263_v33 = vsel %vm936_vm9, %v1262_v2, %v1258_v24 }
 0x1be   :  { %v626_v34 = vpop.xlane.xlu1 %625  ;;  %v1268_v35 = vsel %vm943_vm10, %v1267_v26, %v1263_v33  ;;  %v624_v36 = vpop.xlane.xlu0 %623 }
 0x1bf   :  { %v1277_v5 = vrot.slane %v626_v34, %v2009_v27  ;;  %v1272_v39 = vrot.slane %v624_v36, %v2012_v28 }
 0x1c1   :  { %v1273_v40 = vsel %vm950_vm11, %v1272_v39, %v1268_v35 }
 0x1c2   :  { %v630_v41 = vpop.xlane.xlu1 %629  ;;  %v1278_v42 = vsel %vm957_vm12, %v1277_v5, %v1273_v40  ;;  %v628_v43 = vpop.xlane.xlu0 %627 }
 0x1c3   :  { %v1287_v45 = vrot.slane %v630_v41, %v2023_v46  ;;  %v1282_v47 = vrot.slane %v628_v43, %v2026_v19 }
 0x1c5   :  { %v1283_v48 = vsel %vm964_vm13, %v1282_v47, %v1278_v42 }
 0x1c6   :  { %v1288_v49 = vsel %vm971_vm14, %v1287_v45, %v1283_v48  ;;  %v634_v50 = vpop.xlane.xlu1 %633  ;;  %v632_v52 = vpop.xlane.xlu0 %631 }
 0x1c7   :  { %v1296_v54 = vrot.slane %v634_v50, %v1952_v31  ;;  %v1292_v55 = vrot.slane %v632_v52, %v1946_v29  ;;  %v2169_v56 = vsel %vm1532_vm15, %v1288_v49, %v1531_v53 }
 0x1c9   :  { %v1297_v21 = vsel %vm873_vm0, %v1296_v54, %v1292_v55 }
 0x1ca   :  { %v664_v58 = vpop.xlane.xlu1 %663  ;;  %v636_v59 = vpop.xlane.xlu0 %635 }
 0x1cb   :  { %v1301_v60 = vrot.slane %v636_v59, %v1955_v32  ;;  %v1371_v4 = vrot.slane %v664_v58, %v1946_v29 }
 0x1cd   :  { %v1302_v61 = vsel %vm880_vm1, %v1301_v60, %v1297_v21 }
 0x1ce   :  { %v638_v62 = vpop.xlane.xlu1 %637  ;;  %v666_v63 = vpop.xlane.xlu0 %665 }
 0x1cf   :  { %v1306_v44 = vrot.slane %v638_v62, %v1949_v30  ;;  %v1375_v6 = vrot.slane %v666_v63, %v1952_v31 }
 0x1d1   :  { %v1307_v7 = vsel %vm887_vm2, %v1306_v44, %v1302_v61  ;;  %v1376_v53 = vsel %vm873_vm0, %v1375_v6, %v1371_v4 }
 0x1d2   :  { %v696_v8 = vpop.xlane.xlu1 %695  ;;  %v668_v9 = vpop.xlane.xlu0 %667 }
 0x1d3   :  { %v1380_v10 = vrot.slane %v668_v9, %v1955_v32  ;;  %v1450_v21 = vrot.slane %v696_v8, %v1946_v29 }
 0x1d5   :  { %v1381_v11 = vsel %vm880_vm1, %v1380_v10, %v1376_v53 }
 0x1d6   :  { %v640_v12 = vpop.xlane.xlu1 %639  ;;  %v698_v13 = vpop.xlane.xlu0 %697 }
 0x1d7   :  { %v1454_v52 = vrot.slane %v698_v13, %v1952_v31  ;;  %v1311_v54 = vrot.slane %v640_v12, %v1961_v38 }
 0x1d9   :  { %v1455_v63 = vsel %vm873_vm0, %v1454_v52, %v1450_v21  ;;  %v1312_v44 = vsel %vm894_vm3, %v1311_v54, %v1307_v7  ;;  %vm1534_vm0 = vcmask 1045509  }
 0x1da   :  { %v700_v14 = vpop.xlane.xlu1 %699  ;;  %v670_v15 = vpop.xlane.xlu0 %669 }
 0x1db   :  { %v1459_v55 = vrot.slane %v700_v14, %v1955_v32  ;;  %v1385_v58 = vrot.slane %v670_v15, %v1949_v30 }
 0x1dd   :  { %v1460_v32 = vsel %vm880_vm1, %v1459_v55, %v1455_v63  ;;  %v1386_v53 = vsel %vm887_vm2, %v1385_v58, %v1381_v11  ;;  %vm1536_vm1 = vcmask 1046534  }
 0x1de   :  { %v672_v16 = vpop.xlane.xlu1 %671  ;;  %v642_v17 = vpop.xlane.xlu0 %641 }
 0x1df   :  { %v1390_v61 = vrot.slane %v672_v16, %v1961_v38  ;;  %v1316_v62 = vrot.slane %v642_v17, %v1958_v37 }
 0x1e1   :  { %v1317_v7 = vsel %vm901_vm4, %v1316_v62, %v1312_v44 }
 0x1e2   :  { %v644_v18 = vpop.xlane.xlu1 %643  ;;  %v702_v22 = vpop.xlane.xlu0 %701 }
 0x1e3   :  { %v1321_v4 = vrot.slane %v644_v18, %v1972_v51  ;;  %v1464_v31 = vrot.slane %v702_v22, %v1949_v30  ;;  %v1391_v30 = vsel %vm894_vm3, %v1390_v61, %v1386_v53 }
 0x1e5   :  { %v1322_v11 = vsel %vm908_vm5, %v1321_v4, %v1317_v7 }
 0x1e6   :  { %v704_v23 = vpop.xlane.xlu1 %703  ;;  %v674_v24 = vpop.xlane.xlu0 %673 }
 0x1e7   :  { %v1395_v29 = vrot.slane %v674_v24, %v1958_v37  ;;  %v1469_v8 = vrot.slane %v704_v23, %v1961_v38  ;;  %v1465_v38 = vsel %vm887_vm2, %v1464_v31, %v1460_v32  ;;  %vm1538_vm2 = vcmask 1047559  }
 0x1e9   :  { %v1396_v18 = vsel %vm901_vm4, %v1395_v29, %v1391_v30  ;;  %v1470_v24 = vsel %vm894_vm3, %v1469_v8, %v1465_v38 }
 0x1ea   :  { %v676_v25 = vpop.xlane.xlu1 %675  ;;  %v646_v26 = vpop.xlane.xlu0 %645 }
 0x1eb   :  { %v1326_v6 = vrot.slane %v646_v26, %v1980_v57  ;;  %v1400_v9 = vrot.slane %v676_v25, %v1972_v51 }
 0x1ed   :  { %v1327_v22 = vsel %vm915_vm6, %v1326_v6, %v1322_v11  ;;  %v1401_v25 = vsel %vm908_vm5, %v1400_v9, %v1396_v18 }
 0x1ee   :  { %v648_v2 = vpop.xlane.xlu1 %647  ;;  %v706_v33 = vpop.xlane.xlu0 %705 }
 0x1ef   :  { %v1331_v10 = vrot.slane %v648_v2, %v1988_v3  ;;  %v1474_v14 = vrot.slane %v706_v33, %v1958_v37 }
 0x1f1   :  { %v1332_v26 = vsel %vm922_vm7, %v1331_v10, %v1327_v22 }
 0x1f2   :  { %v2181_v34 = vpop.xlane.xlu1 %707  ;;  %v678_v35 = vpop.xlane.xlu0 %677 }
 0x1f3   :  { %v1405_v16 = vrot.slane %v678_v35, %v1980_v57  ;;  %v1479_v21 = vrot.slane %v2181_v34, %v1972_v51 }
 0x1f6   :  { %v2183_v36 = vpop.xlane.xlu1 %679  ;;  %v650_v5 = vpop.xlane.xlu0 %649 }
 0x1f7   :  { %v1336_v15 = vrot.slane %v650_v5, %v1985_v0  ;;  %v1410_v23 = vrot.slane %v2183_v36, %v1988_v3  ;;  %v1475_v5 = vsel %vm901_vm4, %v1474_v14, %v1470_v24 }
 0x1fa   :  { %v652_v39 = vpop.xlane.xlu1 %651  ;;  %v2185_v40 = vpop.xlane.xlu0 %709 }
 0x1fb   :  { %v1341_v17 = vrot.slane %v652_v39, %v2004_v1  ;;  %v1337_v39 = vsel %vm929_vm8, %v1336_v15, %v1332_v26 }
 0x1fd   :  { %v1342_v54 = vsel %vm936_vm9, %v1341_v17, %v1337_v39 }
 0x1fe   :  { %v2187_v41 = vpop.xlane.xlu1 %711  ;;  %v2189_v42 = vpop.xlane.xlu0 %681 }
 0x1ff   :  { %v1415_v52 = vrot.slane %v2189_v42, %v1985_v0  ;;  %v1489_v62 = vrot.slane %v2187_v41, %v1988_v3 }
 0x202   :  { %v2191_v43 = vpop.xlane.xlu1 %683  ;;  %v654_v45 = vpop.xlane.xlu0 %653 }
 0x203   :  { %v1346_v37 = vrot.slane %v654_v45, %v2001_v20  ;;  %v1406_v45 = vsel %vm915_vm6, %v1405_v16, %v1401_v25  ;;  %v1420_v55 = vrot.slane %v2191_v43, %v2004_v1 }
 0x204   :  { %v1411_v58 = vsel %vm922_vm7, %v1410_v23, %v1406_v45  ;;  %v1572_v23 = vld [vmem:[%s2316_s3] ss:$0 sm:$0xff] }
 0x205   :  { %v1347_v61 = vsel %vm943_vm10, %v1346_v37, %v1342_v54  ;;  %v1416_v34 = vsel %vm929_vm8, %v1415_v52, %v1411_v58 }
 0x206   :  { %v656_v47 = vpop.xlane.xlu1 %655  ;;  %v2193_v48 = vpop.xlane.xlu0 %713 }
 0x207   :  { %v1351_v2 = vrot.slane %v656_v47, %v2012_v28  ;;  %v1494_v3 = vrot.slane %v2193_v48, %v1985_v0 }
 0x209   :  { %v1352_v43 = vsel %vm950_vm11, %v1351_v2, %v1347_v61 }
 0x20a   :  { %v2195_v49 = vpop.xlane.xlu1 %715  ;;  %v2197_v50 = vpop.xlane.xlu0 %685 }
 0x20b   :  { %v1425_v42 = vrot.slane %v2197_v50, %v2001_v20  ;;  %v1499_v32 = vrot.slane %v2195_v49, %v2004_v1 }
 0x20e   :  { %v2204_v59 = vpop.xlane.xlu1 %687  ;;  %v658_v60 = vpop.xlane.xlu0 %657 }
 0x20f   :  { %v1356_v36 = vrot.slane %v658_v60, %v2009_v27  ;;  %v1484_v60 = vrot.slane %v2185_v40, %v1980_v57  ;;  %v1430_v63 = vrot.slane %v2204_v59, %v2012_v28  ;;  %v1421_v57 = vsel %vm936_vm9, %v1420_v55, %v1416_v34 }
 0x210   :  { %v1480_v59 = vsel %vm908_vm5, %v1479_v21, %v1475_v5  ;;  %v1426_v29 = vsel %vm943_vm10, %v1425_v42, %v1421_v57 }
 0x211   :  { %v1357_v31 = vsel %vm957_vm12, %v1356_v36, %v1352_v43  ;;  %v1485_v53 = vsel %vm915_vm6, %v1484_v60, %v1480_v59  ;;  %v1431_v8 = vsel %vm950_vm11, %v1430_v63, %v1426_v29 }
 0x212   :  { %v660_v12 = vpop.xlane.xlu1 %659  ;;  %v2219_v13 = vpop.xlane.xlu0 %717 }
 0x213   :  { %v1361_v47 = vrot.slane %v660_v12, %v2026_v19  ;;  %v1504_v0 = vrot.slane %v2219_v13, %v2001_v20  ;;  %v1490_v12 = vsel %vm922_vm7, %v1489_v62, %v1485_v53 }
 0x214   :  { %v1495_v7 = vsel %vm929_vm8, %v1494_v3, %v1490_v12 }
 0x215   :  { %v1362_v40 = vsel %vm964_vm13, %v1361_v47, %v1357_v31  ;;  %v1500_v20 = vsel %vm936_vm9, %v1499_v32, %v1495_v7 }
 0x216   :  { %v720_v33 = vpop.xlane.xlu1 %719  ;;  %v690_v35 = vpop.xlane.xlu0 %689 }
 0x217   :  { %v1435_v44 = vrot.slane %v690_v35, %v2009_v27  ;;  %v1509_v1 = vrot.slane %v720_v33, %v2012_v28 }
 0x219   :  { %v1436_v49 = vsel %vm957_vm12, %v1435_v44, %v1431_v8 }
 0x21a   :  { %v692_v4 = vpop.xlane.xlu1 %691  ;;  %v662_v51 = vpop.xlane.xlu0 %661 }
 0x21b   :  { %v1366_v50 = vrot.slane %v662_v51, %v2023_v46  ;;  %v1440_v41 = vrot.slane %v692_v4, %v2026_v19 }
 0x21d   :  { %v1367_v6 = vsel %vm971_vm14, %v1366_v50, %v1362_v40  ;;  %v1441_v14 = vsel %vm964_vm13, %v1440_v41, %v1436_v49 }
 0x21e   :  { %v694_v48 = vpop.xlane.xlu1 %693  ;;  %v722_v9 = vpop.xlane.xlu0 %721  ;;  %v1535_v10 = vsel %vm1534_vm0, %v1367_v6, %v2169_v56  ;;  %v1505_v56 = vsel %vm943_vm10, %v1504_v0, %v1500_v20 }
 0x21f   :  { %v1445_v30 = vrot.slane %v694_v48, %v2023_v46  ;;  %v1514_v15 = vrot.slane %v722_v9, %v2009_v27  ;;  %v1510_v16 = vsel %vm950_vm11, %v1509_v1, %v1505_v56 }
 0x221   :  { %v1446_v13 = vsel %vm971_vm14, %v1445_v30, %v1441_v14  ;;  %v1515_v22 = vsel %vm957_vm12, %v1514_v15, %v1510_v16 }
 0x222   :  { %v724_v11 = vpop.xlane.xlu0 %723  ;;  %v726_v38 = vpop.xlane.xlu1 %725  ;;  %v1537_v28 = vsel %vm1536_vm1, %v1446_v13, %v1535_v10 }
 0x223   :  { %v1519_v17 = vrot.slane %v724_v11, %v2026_v19  ;;  %v1524_v18 = vrot.slane %v726_v38, %v2023_v46 }
 0x225   :  { %v1520_v27 = vsel %vm964_vm13, %v1519_v17, %v1515_v22 }
 0x226   :  { %v1525_v37 = vsel %vm971_vm14, %v1524_v18, %v1520_v27 }
 0x227   :  { %v1539_v24 = vsel %vm1538_vm2, %v1525_v37, %v1537_v28 }
 0x228   :  { %v1541_v25 = vsub.f32 %v1572_v23, %v1539_v24 }
 0x22a   :  { %v1542_v26 = vmax.f32 %v1541_v25, 0.0 }
 0x22c   :  { %1543 = vst [vmem:[#allocation9] sm:$0xff] %v1542_v26 }
 0x22d   :  { %1666 = shalt.err (!%p1663_p1)
}
 0x22e   :  { %s1667_s3 = scalar_lea.hbm %s2317_s4, 128 }
 0x22f   :  { %p1668_p2 = scmp.ne.s32.totalorder %s2317_s4, %s1667_s3  ;;  %p1671_p3 = scmp.lt.u32.totalorder %s1667_s3, %s2317_s4 }
 0x231   :  { %p1673_p4 = pnand %p1671_p3, %p1668_p2 }
 0x233   :  { %1676 = shalt.err (!%p1673_p4)
}
 0x234   :  { %1553 = dma.vmem_to_hbm [thread:$0]  %s1551_s6, 128, %s2317_s4, [#allocation5]  }
 0x235   :  { %1685 = dma.done.wait [#allocation5], 128  }
 0x236   :  { %1686 = vsyncadd [#allocation5], 4294967168 }
 0x237   :  { %1557 = vsyncpa [#allocation4], 1 }
 0x238   :  { %1558 = vsyncpa [#allocation7], 1 }
 0x239   :  { %1559 = vsyncpa [#allocation5], 1 }

</bundles_post_ra>
